<compile_context>
chip_gen: v7x
topology: tpu7x:2x2x1
jax: 0.10.0
libtpu: 0.0.40
codegen_flags: <defaults>
</compile_context>

<pallas_src>
import functools
import math

import numpy as np

import jax
import jax.numpy as jnp
from jax.experimental import pallas as pl
from jax.experimental.pallas import tpu as pltpu

BN_EPS = 1e-5
NEG_INF = -1e30


# ------------------------------ tiling helpers --------------------------------
def _pick_bt_tile(bt, n_inst):
    """Largest divisor of B*T giving >= 2 grid steps and <= ~512 rows per tile."""
    cands = [d for d in range(1, bt) if bt % d == 0 and d * n_inst <= 512]
    return max(cands) if cands else bt


def _pick_c_tile(n_batch, n_chan, n_len, max_block_bytes=4 << 20):
    """Largest multiple-of-8 divisor of C with >= 2 grid steps and a bounded block."""
    cands = [c for c in range(8, n_chan, 8)
             if n_chan % c == 0 and n_batch * c * n_len * 4 <= max_block_bytes]
    return max(cands) if cands else n_chan


def _full_spec(arr):
    nd = arr.ndim
    return pl.BlockSpec(arr.shape, lambda i, _nd=nd: (0,) * _nd)


def _build_tile_mask(bt_tile, group_sizes):
    """Additive mask [R, R], R = bt_tile*N: 0 iff same (b,t) slice AND same VM group."""
    gid = np.concatenate(
        [np.full(g, gi, np.int32) for gi, g in enumerate(group_sizes)])
    same_group = gid[:, None] == gid[None, :]                  # [N, N]
    valid = np.kron(np.eye(bt_tile, dtype=bool), same_group)   # [R, R]
    return jnp.asarray(np.where(valid, 0.0, NEG_INF), dtype=jnp.float32)


# ----------------------------- BatchNorm1d kernel -----------------------------
def _bn_kernel(x_ref, g_ref, b_ref, o_ref):
    # x block: [B, C_tile, L]; training-mode BatchNorm1d: stats over (B, L)
    # per channel -> tiling over C is exact.
    x = x_ref[...].astype(jnp.float32)
    mean = jnp.mean(x, axis=(0, 2), keepdims=True)
    var = jnp.mean((x - mean) ** 2, axis=(0, 2), keepdims=True)
    xn = (x - mean) * jax.lax.rsqrt(var + BN_EPS)
    g = g_ref[...][None, :, :]    # [1, C_tile, 1]
    b = b_ref[...][None, :, :]
    o_ref[...] = (xn * g + b).astype(o_ref.dtype)


def batchnorm1d(x, gamma, beta):
    """x: [B, C, L]; gamma/beta: [C, 1]. Channel-tiled, parallel grid axis."""
    B, C, L = x.shape
    c_tile = _pick_c_tile(B, C, L)
    return pl.pallas_call(
        _bn_kernel,
        out_shape=jax.ShapeDtypeStruct((B, C, L), x.dtype),
        grid=(C // c_tile,),
        in_specs=[
            pl.BlockSpec((B, c_tile, L), lambda i: (0, i, 0)),
            pl.BlockSpec((c_tile, 1), lambda i: (i, 0)),
            pl.BlockSpec((c_tile, 1), lambda i: (i, 0)),
        ],
        out_specs=pl.BlockSpec((B, c_tile, L), lambda i: (0, i, 0)),
        compiler_params=pltpu.CompilerParams(dimension_semantics=("parallel",)),
    )(x, gamma, beta)


# -------------------- grouped multi-head attention kernel ---------------------
def _vm_attn_kernel(x_ref, wqkv_ref, bqkv_ref, wo_ref, bo_ref, mask_ref, o_ref,
                    *, n_heads, d_head):
    D = n_heads * d_head
    x = x_ref[...].astype(jnp.float32)                       # [R, D], R = BT_TILE*N

    # Fused QKV: one MXU matmul instead of three.
    qkv = (jnp.dot(x, wqkv_ref[...].astype(jnp.float32),
                   preferred_element_type=jnp.float32)
           + bqkv_ref[...].astype(jnp.float32))              # [R, 3D]

    scale = 1.0 / math.sqrt(d_head)
    q = qkv[:, :D] * scale
    k = qkv[:, D:2 * D]
    v = qkv[:, 2 * D:]

    mask = mask_ref[...]                                     # [R, R] additive mask
    wo = wo_ref[...].astype(jnp.float32)                     # [D, D] (= torch W_o^T)

    # Static unroll over heads.  Scores are computed tile-wide ([R, R]) so every
    # (b, t) slice and every VM group shares the same pair of MXU matmuls; the
    # mask zeroes cross-(b,t)/cross-group probabilities exactly.
    acc = None
    for h in range(n_heads):
        sl = slice(h * d_head, (h + 1) * d_head)
        s = jax.lax.dot_general(q[:, sl], k[:, sl],
                                (((1,), (1,)), ((), ())),
                                preferred_element_type=jnp.float32) + mask
        s = s - jnp.max(s, axis=-1, keepdims=True)
        p = jnp.exp(s)
        p = p * pl.reciprocal(jnp.sum(p, axis=-1, keepdims=True), approx=True)
        o_h = jnp.dot(p, v[:, sl], preferred_element_type=jnp.float32)   # [R, d_head]
        # out-projection accumulated per head == concat(heads) @ W_o^T (no lane concat)
        proj = jnp.dot(o_h, wo[sl, :], preferred_element_type=jnp.float32)
        acc = proj if acc is None else acc + proj

    out = acc + bo_ref[...].astype(jnp.float32) + x          # + bias, + residual(norm1(x))
    o_ref[...] = out.astype(o_ref.dtype)


def vm_grouped_attention(x_flat, group_sizes, params, n_heads, *, n_inst, bt):
    """x_flat: [B*T*N, D] (post-norm1).  Returns attention(x) + out_proj + residual."""
    rows_total, D = x_flat.shape
    d_head = D // n_heads
    bt_tile = _pick_bt_tile(bt, n_inst)
    rows = bt_tile * n_inst
    mask = _build_tile_mask(bt_tile, group_sizes)             # [rows, rows]

    kern = functools.partial(_vm_attn_kernel, n_heads=n_heads, d_head=d_head)
    return pl.pallas_call(
        kern,
        out_shape=jax.ShapeDtypeStruct((rows_total, D), x_flat.dtype),
        grid=(bt // bt_tile,),
        in_specs=[
            pl.BlockSpec((rows, D), lambda i: (i, 0)),
            _full_spec(params["wqkv"]),   # [D, 3D]
            _full_spec(params["bqkv"]),   # [1, 3D]
            _full_spec(params["wo_t"]),   # [D, D]
            _full_spec(params["bo"]),     # [1, D]
            _full_spec(mask),             # [rows, rows]
        ],
        out_specs=pl.BlockSpec((rows, D), lambda i: (i, 0)),
        compiler_params=pltpu.CompilerParams(dimension_semantics=("parallel",)),
    )(x_flat, params["wqkv"], params["bqkv"], params["wo_t"], params["bo"], mask)


# ------------------------------ module forward --------------------------------
def vm_attention_module_forward(x, params, *, group_sizes, n_heads):
    """x: [B, T, N, d_model].

    group_sizes is the STATIC equivalent of instances_index_vm[0][0].squeeze()
    .tolist() in the PyTorch module; keeping it static removes the device->host
    sync and makes the whole forward jittable.
    """
    B, T, N, D = x.shape
    assert sum(group_sizes) == N and D % n_heads == 0

    # norm1
    x1 = batchnorm1d(x.reshape(B, T * N, D), params["bn1_gamma"], params["bn1_beta"])

    # per-VM multi-head self-attention + out-projection + residual
    # (all VM groups and all (b, t) slices in a single pallas_call)
    x_attn = vm_grouped_attention(x1.reshape(B * T * N, D), group_sizes, params,
                                  n_heads, n_inst=N, bt=B * T)

    # norm2
    out = batchnorm1d(x_attn.reshape(B, T * N, D),
                      params["bn2_gamma"], params["bn2_beta"])
    out = out.reshape(B, T, N, D)

    attns = [None] * len(group_sizes)   # output_attention=False
    return out, attns                   # dropout == identity (see header)


# --------------------------- deterministic params -----------------------------
def init_params(key, d_model, n_channels):
    ks = jax.random.split(key, 12)
    bound = 1.0 / math.sqrt(d_model)

    def lin(kw, kb):
        w = jax.random.uniform(kw, (d_model, d_model), jnp.float32, -bound, bound)
        b = jax.random.uniform(kb, (1, d_model), jnp.float32, -bound, bound)
        return w, b

    wq, bq = lin(ks[0], ks[1])
    wk, bk = lin(ks[2], ks[3])
    wv, bv = lin(ks[4], ks[5])
    wo, bo = lin(ks[6], ks[7])
    return dict(
        # raw PyTorch-style parameters (used by the pure-JAX reference)
        wq=wq, bq=bq, wk=wk, bk=bk, wv=wv, bv=bv, wo=wo, bo=bo,
        # fused / pre-transposed layouts consumed by the Pallas kernel
        wqkv=jnp.concatenate([wq.T, wk.T, wv.T], axis=1),   # [D, 3D]
        bqkv=jnp.concatenate([bq, bk, bv], axis=1),         # [1, 3D]
        wo_t=wo.T,                                          # [D, D]
        # BatchNorm affine params (compact 2-D layout, no trailing size-1 lane pad)
        bn1_gamma=1.0 + 0.1 * jax.random.uniform(ks[8], (n_channels, 1), jnp.float32),
        bn1_beta=0.1 * jax.random.uniform(ks[9], (n_channels, 1), jnp.float32),
        bn2_gamma=1.0 + 0.1 * jax.random.uniform(ks[10], (n_channels, 1), jnp.float32),
        bn2_beta=0.1 * jax.random.uniform(ks[11], (n_channels, 1), jnp.float32),
    )


# ------------------------------ pure-JAX reference -----------------------------
def reference_forward(x, group_sizes, params, n_heads):
    B, T, N, D = x.shape
    d_head = D // n_heads

    def bn(z, g, b):  # z: [B, C, L]; g/b: [C, 1]
        m = z.mean(axis=(0, 2), keepdims=True)
        v = ((z - m) ** 2).mean(axis=(0, 2), keepdims=True)
        return (z - m) / jnp.sqrt(v + BN_EPS) * g[None] + b[None]

    x1 = bn(x.reshape(B, T * N, D), params["bn1_gamma"],
            params["bn1_beta"]).reshape(B, T, N, D)
    outs, off = [], 0
    for ng in group_sizes:
        xg = x1[:, :, off:off + ng, :]
        off += ng
        q = (xg @ params["wq"].T + params["bq"][0]).reshape(B, T, ng, n_heads, d_head)
        k = (xg @ params["wk"].T + params["bk"][0]).reshape(B, T, ng, n_heads, d_head)
        v = (xg @ params["wv"].T + params["bv"][0]).reshape(B, T, ng, n_heads, d_head)
        s = jnp.einsum("btnhe,btmhe->bthnm", q, k) / math.sqrt(d_head)
        p = jax.nn.softmax(s, axis=-1)
        o = jnp.einsum("bthnm,btmhe->btnhe", p, v).reshape(B, T, ng, D)
        outs.append(o @ params["wo"].T + params["bo"][0])
    x_cat = jnp.concatenate(outs, axis=2) + x1
    out = bn(x_cat.reshape(B, T * N, D), params["bn2_gamma"],
             params["bn2_beta"]).reshape(B, T, N, D)
    return out


if __name__ == "__main__":
    # num_instances=6, history_steps=8, d_model=32, n_heads=4, batch=2
    B, T, N, D, H = 2, 8, 6, 32, 4
    group_sizes = (2, 4)            # instances per VM (static; sums to N)

    key = jax.random.PRNGKey(0)
    kx, kp = jax.random.split(key)
    x = jax.random.normal(kx, (B, T, N, D), jnp.float32)
    params = init_params(kp, D, T * N)

    fwd = jax.jit(vm_attention_module_forward,
                  static_argnames=("group_sizes", "n_heads"))
    out, attns = fwd(x, params, group_sizes=group_sizes, n_heads=H)
    out = jax.block_until_ready(out)

    assert out.shape == (B, T, N, D)
    assert all(a is None for a in attns)

    ref = reference_forward(x, group_sizes, params, H)
    err = float(jnp.max(jnp.abs(out - ref)))
    # tolerance leaves room for the approximate (EUP) softmax reciprocal
    if err > 2e-2:
        raise AssertionError(f"Pallas output mismatch vs reference: max abs err = {err}")

    print("KERNEL_OK")
</pallas_src>

<mosaic_0001>
module attributes {stable_mosaic.version = 11 : i64} {
  func.func @_bn_kernel(%arg0: i32, %arg1: memref<2x24x32xf32, #tpu.memory_space<vmem>>, %arg2: memref<24x1xf32, #tpu.memory_space<vmem>>, %arg3: memref<24x1xf32, #tpu.memory_space<vmem>>, %arg4: memref<2x24x32xf32, #tpu.memory_space<vmem>>) attributes {dimension_semantics = [#tpu.dimension_semantics<parallel>], iteration_bounds = array<i64: 2>, scalar_prefetch = 0 : i64, scratch_operands = 0 : i64, tpu.core_type = #tpu.core_type<tc>, window_params = [{transform_indices = @transform_0, window_bounds = array<i64: 2, 24, 32>}, {transform_indices = @transform_1, window_bounds = array<i64: 24, 1>}, {transform_indices = @transform_2, window_bounds = array<i64: 24, 1>}, {transform_indices = @transform_3, window_bounds = array<i64: 2, 24, 32>}]} {
    %c0 = arith.constant 0 : index
    %c0_0 = arith.constant 0 : index
    %c0_1 = arith.constant 0 : index
    %0 = vector.load %arg1[%c0, %c0_0, %c0_1] : memref<2x24x32xf32, #tpu.memory_space<vmem>>, vector<2x24x32xf32>
    %cst = arith.constant dense<0.000000e+00> : vector<24xf32>
    %1 = vector.multi_reduction <add>, %0, %cst [0, 2] : vector<2x24x32xf32> to vector<24xf32>
    %2 = vector.shape_cast %1 : vector<24xf32> to vector<1x24x1xf32>
    %cst_2 = arith.constant 6.400000e+01 : f32
    %3 = vector.broadcast %cst_2 : f32 to vector<1x24x1xf32>
    %4 = arith.divf %2, %3 : vector<1x24x1xf32>
    %5 = vector.broadcast %4 : vector<1x24x1xf32> to vector<2x24x32xf32>
    %6 = arith.subf %0, %5 : vector<2x24x32xf32>
    %7 = arith.mulf %6, %6 : vector<2x24x32xf32>
    %cst_3 = arith.constant dense<0.000000e+00> : vector<24xf32>
    %8 = vector.multi_reduction <add>, %7, %cst_3 [0, 2] : vector<2x24x32xf32> to vector<24xf32>
    %9 = vector.shape_cast %8 : vector<24xf32> to vector<1x24x1xf32>
    %cst_4 = arith.constant 6.400000e+01 : f32
    %10 = vector.broadcast %cst_4 : f32 to vector<1x24x1xf32>
    %11 = arith.divf %9, %10 : vector<1x24x1xf32>
    %12 = vector.broadcast %4 : vector<1x24x1xf32> to vector<2x24x32xf32>
    %13 = arith.subf %0, %12 : vector<2x24x32xf32>
    %cst_5 = arith.constant 9.99999974E-6 : f32
    %14 = vector.broadcast %cst_5 : f32 to vector<1x24x1xf32>
    %15 = arith.addf %11, %14 : vector<1x24x1xf32>
    %16 = math.rsqrt %15 : vector<1x24x1xf32>
    %17 = vector.broadcast %16 : vector<1x24x1xf32> to vector<2x24x32xf32>
    %18 = arith.mulf %13, %17 : vector<2x24x32xf32>
    %c0_6 = arith.constant 0 : index
    %c0_7 = arith.constant 0 : index
    %19 = vector.load %arg2[%c0_6, %c0_7] : memref<24x1xf32, #tpu.memory_space<vmem>>, vector<24x1xf32>
    %20 = vector.shape_cast %19 : vector<24x1xf32> to vector<1x24x1xf32>
    %c0_8 = arith.constant 0 : index
    %c0_9 = arith.constant 0 : index
    %21 = vector.load %arg3[%c0_8, %c0_9] : memref<24x1xf32, #tpu.memory_space<vmem>>, vector<24x1xf32>
    %22 = vector.shape_cast %21 : vector<24x1xf32> to vector<1x24x1xf32>
    %23 = vector.broadcast %20 : vector<1x24x1xf32> to vector<2x24x32xf32>
    %24 = arith.mulf %18, %23 : vector<2x24x32xf32>
    %25 = vector.broadcast %22 : vector<1x24x1xf32> to vector<2x24x32xf32>
    %26 = arith.addf %24, %25 : vector<2x24x32xf32>
    %c0_10 = arith.constant 0 : index
    %c0_11 = arith.constant 0 : index
    %c0_12 = arith.constant 0 : index
    %27 = vector.load %arg4[%c0_10, %c0_11, %c0_12] : memref<2x24x32xf32, #tpu.memory_space<vmem>>, vector<2x24x32xf32>
    tpu.vector_store %arg4[%c0_10, %c0_11, %c0_12], %26 {strides = array<i32>} : memref<2x24x32xf32, #tpu.memory_space<vmem>>, vector<2x24x32xf32>,
    return
  }
  func.func @transform_0(%arg0: i32) -> (i32, i32, i32) {
    %c0_i32 = arith.constant 0 : i32
    %c0_i32_0 = arith.constant 0 : i32
    %c0_i32_1 = arith.constant 0 : i32
    return %c0_i32, %arg0, %c0_i32_0 : i32, i32, i32
  }
  func.func @transform_1(%arg0: i32) -> (i32, i32) {
    %c0_i32 = arith.constant 0 : i32
    %c0_i32_0 = arith.constant 0 : i32
    return %arg0, %c0_i32 : i32, i32
  }
  func.func @transform_2(%arg0: i32) -> (i32, i32) {
    %c0_i32 = arith.constant 0 : i32
    %c0_i32_0 = arith.constant 0 : i32
    return %arg0, %c0_i32 : i32, i32
  }
  func.func @transform_3(%arg0: i32) -> (i32, i32, i32) {
    %c0_i32 = arith.constant 0 : i32
    %c0_i32_0 = arith.constant 0 : i32
    %c0_i32_1 = arith.constant 0 : i32
    return %c0_i32, %arg0, %c0_i32_0 : i32, i32, i32
  }
}

module attributes {stable_mosaic.version = 11 : i64} {
  func.func @_vm_attn_kernel(%arg0: i32, %arg1: memref<48x32xf32, #tpu.memory_space<vmem>>, %arg2: memref<32x96xf32, #tpu.memory_space<vmem>>, %arg3: memref<1x96xf32, #tpu.memory_space<vmem>>, %arg4: memref<32x32xf32, #tpu.memory_space<vmem>>, %arg5: memref<1x32xf32, #tpu.memory_space<vmem>>, %arg6: memref<48x48xf32, #tpu.memory_space<vmem>>, %arg7: memref<48x32xf32, #tpu.memory_space<vmem>>) attributes {dimension_semantics = [#tpu.dimension_semantics<parallel>], iteration_bounds = array<i64: 2>, scalar_prefetch = 0 : i64, scratch_operands = 0 : i64, tpu.core_type = #tpu.core_type<tc>, window_params = [{transform_indices = @transform_0, window_bounds = array<i64: 48, 32>}, {pipeline_mode = #tpu.pipeline_mode<synchronous>, transform_indices = @transform_1, window_bounds = array<i64: 32, 96>}, {pipeline_mode = #tpu.pipeline_mode<synchronous>, transform_indices = @transform_2, window_bounds = array<i64: 1, 96>}, {pipeline_mode = #tpu.pipeline_mode<synchronous>, transform_indices = @transform_3, window_bounds = array<i64: 32, 32>}, {pipeline_mode = #tpu.pipeline_mode<synchronous>, transform_indices = @transform_4, window_bounds = array<i64: 1, 32>}, {pipeline_mode = #tpu.pipeline_mode<synchronous>, transform_indices = @transform_5, window_bounds = array<i64: 48, 48>}, {transform_indices = @transform_6, window_bounds = array<i64: 48, 32>}]} {
    %c0 = arith.constant 0 : index
    %c0_0 = arith.constant 0 : index
    %0 = vector.load %arg1[%c0, %c0_0] : memref<48x32xf32, #tpu.memory_space<vmem>>, vector<48x32xf32>
    %c0_1 = arith.constant 0 : index
    %c0_2 = arith.constant 0 : index
    %1 = vector.load %arg2[%c0_1, %c0_2] : memref<32x96xf32, #tpu.memory_space<vmem>>, vector<32x96xf32>
    %cst = arith.constant dense<0.000000e+00> : vector<48x96xf32>
    %2 = tpu.matmul %0, %1, %cst {dimension_numbers = #tpu.dot_dimension_numbers<[1], [0], [0], [1], [0, 0, 1, 1], [], []>} : vector<48x32xf32>, vector<32x96xf32>, vector<48x96xf32> -> vector<48x96xf32>
    %c0_3 = arith.constant 0 : index
    %c0_4 = arith.constant 0 : index
    %3 = vector.load %arg3[%c0_3, %c0_4] : memref<1x96xf32, #tpu.memory_space<vmem>>, vector<1x96xf32>
    %4 = vector.broadcast %3 : vector<1x96xf32> to vector<48x96xf32>
    %5 = arith.addf %2, %4 : vector<48x96xf32>
    %6 = vector.extract_strided_slice %5 {offsets = [0, 0], sizes = [48, 32], strides = [1, 1]} : vector<48x96xf32> to vector<48x32xf32>
    %cst_5 = arith.constant 0.353553385 : f32
    %7 = vector.broadcast %cst_5 : f32 to vector<48x32xf32>
    %8 = arith.mulf %6, %7 : vector<48x32xf32>
    %9 = vector.extract_strided_slice %5 {offsets = [0, 32], sizes = [48, 32], strides = [1, 1]} : vector<48x96xf32> to vector<48x32xf32>
    %10 = vector.extract_strided_slice %5 {offsets = [0, 64], sizes = [48, 32], strides = [1, 1]} : vector<48x96xf32> to vector<48x32xf32>
    %c0_6 = arith.constant 0 : index
    %c0_7 = arith.constant 0 : index
    %11 = vector.load %arg6[%c0_6, %c0_7] : memref<48x48xf32, #tpu.memory_space<vmem>>, vector<48x48xf32>
    %c0_8 = arith.constant 0 : index
    %c0_9 = arith.constant 0 : index
    %12 = vector.load %arg4[%c0_8, %c0_9] : memref<32x32xf32, #tpu.memory_space<vmem>>, vector<32x32xf32>
    %13 = vector.extract_strided_slice %8 {offsets = [0, 0], sizes = [48, 8], strides = [1, 1]} : vector<48x32xf32> to vector<48x8xf32>
    %14 = vector.extract_strided_slice %9 {offsets = [0, 0], sizes = [48, 8], strides = [1, 1]} : vector<48x32xf32> to vector<48x8xf32>
    %cst_10 = arith.constant dense<0.000000e+00> : vector<48x48xf32>
    %15 = tpu.matmul %13, %14, %cst_10 {dimension_numbers = #tpu.dot_dimension_numbers<[1], [1], [0], [0], [0, 0, 1, 0], [], []>} : vector<48x8xf32>, vector<48x8xf32>, vector<48x48xf32> -> vector<48x48xf32>
    %16 = arith.addf %15, %11 : vector<48x48xf32>
    %cst_11 = arith.constant dense<0xFF800000> : vector<48xf32>
    %17 = vector.multi_reduction <maximumf>, %16, %cst_11 [1] : vector<48x48xf32> to vector<48xf32>
    %18 = vector.shape_cast %17 : vector<48xf32> to vector<48x1xf32>
    %19 = vector.broadcast %18 : vector<48x1xf32> to vector<48x48xf32>
    %20 = arith.subf %16, %19 : vector<48x48xf32>
    %21 = math.exp %20 : vector<48x48xf32>
    %cst_12 = arith.constant dense<0.000000e+00> : vector<48xf32>
    %22 = vector.multi_reduction <add>, %21, %cst_12 [1] : vector<48x48xf32> to vector<48xf32>
    %23 = vector.shape_cast %22 : vector<48xf32> to vector<48x1xf32>
    %24 = tpu.reciprocal %23 {approx = true} : vector<48x1xf32> -> vector<48x1xf32>
    %25 = vector.broadcast %24 : vector<48x1xf32> to vector<48x48xf32>
    %26 = arith.mulf %21, %25 : vector<48x48xf32>
    %27 = vector.extract_strided_slice %10 {offsets = [0, 0], sizes = [48, 8], strides = [1, 1]} : vector<48x32xf32> to vector<48x8xf32>
    %cst_13 = arith.constant dense<0.000000e+00> : vector<48x8xf32>
    %28 = tpu.matmul %26, %27, %cst_13 {dimension_numbers = #tpu.dot_dimension_numbers<[1], [0], [0], [1], [0, 0, 1, 1], [], []>} : vector<48x48xf32>, vector<48x8xf32>, vector<48x8xf32> -> vector<48x8xf32>
    %29 = vector.extract_strided_slice %12 {offsets = [0, 0], sizes = [8, 32], strides = [1, 1]} : vector<32x32xf32> to vector<8x32xf32>
    %cst_14 = arith.constant dense<0.000000e+00> : vector<48x32xf32>
    %30 = tpu.matmul %28, %29, %cst_14 {dimension_numbers = #tpu.dot_dimension_numbers<[1], [0], [0], [1], [0, 0, 1, 1], [], []>} : vector<48x8xf32>, vector<8x32xf32>, vector<48x32xf32> -> vector<48x32xf32>
    %31 = vector.extract_strided_slice %8 {offsets = [0, 8], sizes = [48, 8], strides = [1, 1]} : vector<48x32xf32> to vector<48x8xf32>
    %32 = vector.extract_strided_slice %9 {offsets = [0, 8], sizes = [48, 8], strides = [1, 1]} : vector<48x32xf32> to vector<48x8xf32>
    %cst_15 = arith.constant dense<0.000000e+00> : vector<48x48xf32>
    %33 = tpu.matmul %31, %32, %cst_15 {dimension_numbers = #tpu.dot_dimension_numbers<[1], [1], [0], [0], [0, 0, 1, 0], [], []>} : vector<48x8xf32>, vector<48x8xf32>, vector<48x48xf32> -> vector<48x48xf32>
    %34 = arith.addf %33, %11 : vector<48x48xf32>
    %cst_16 = arith.constant dense<0xFF800000> : vector<48xf32>
    %35 = vector.multi_reduction <maximumf>, %34, %cst_16 [1] : vector<48x48xf32> to vector<48xf32>
    %36 = vector.shape_cast %35 : vector<48xf32> to vector<48x1xf32>
    %37 = vector.broadcast %36 : vector<48x1xf32> to vector<48x48xf32>
    %38 = arith.subf %34, %37 : vector<48x48xf32>
    %39 = math.exp %38 : vector<48x48xf32>
    %cst_17 = arith.constant dense<0.000000e+00> : vector<48xf32>
    %40 = vector.multi_reduction <add>, %39, %cst_17 [1] : vector<48x48xf32> to vector<48xf32>
    %41 = vector.shape_cast %40 : vector<48xf32> to vector<48x1xf32>
    %42 = tpu.reciprocal %41 {approx = true} : vector<48x1xf32> -> vector<48x1xf32>
    %43 = vector.broadcast %42 : vector<48x1xf32> to vector<48x48xf32>
    %44 = arith.mulf %39, %43 : vector<48x48xf32>
    %45 = vector.extract_strided_slice %10 {offsets = [0, 8], sizes = [48, 8], strides = [1, 1]} : vector<48x32xf32> to vector<48x8xf32>
    %cst_18 = arith.constant dense<0.000000e+00> : vector<48x8xf32>
    %46 = tpu.matmul %44, %45, %cst_18 {dimension_numbers = #tpu.dot_dimension_numbers<[1], [0], [0], [1], [0, 0, 1, 1], [], []>} : vector<48x48xf32>, vector<48x8xf32>, vector<48x8xf32> -> vector<48x8xf32>
    %47 = vector.extract_strided_slice %12 {offsets = [8, 0], sizes = [8, 32], strides = [1, 1]} : vector<32x32xf32> to vector<8x32xf32>
    %cst_19 = arith.constant dense<0.000000e+00> : vector<48x32xf32>
    %48 = tpu.matmul %46, %47, %cst_19 {dimension_numbers = #tpu.dot_dimension_numbers<[1], [0], [0], [1], [0, 0, 1, 1], [], []>} : vector<48x8xf32>, vector<8x32xf32>, vector<48x32xf32> -> vector<48x32xf32>
    %49 = arith.addf %30, %48 : vector<48x32xf32>
    %50 = vector.extract_strided_slice %8 {offsets = [0, 16], sizes = [48, 8], strides = [1, 1]} : vector<48x32xf32> to vector<48x8xf32>
    %51 = vector.extract_strided_slice %9 {offsets = [0, 16], sizes = [48, 8], strides = [1, 1]} : vector<48x32xf32> to vector<48x8xf32>
    %cst_20 = arith.constant dense<0.000000e+00> : vector<48x48xf32>
    %52 = tpu.matmul %50, %51, %cst_20 {dimension_numbers = #tpu.dot_dimension_numbers<[1], [1], [0], [0], [0, 0, 1, 0], [], []>} : vector<48x8xf32>, vector<48x8xf32>, vector<48x48xf32> -> vector<48x48xf32>
    %53 = arith.addf %52, %11 : vector<48x48xf32>
    %cst_21 = arith.constant dense<0xFF800000> : vector<48xf32>
    %54 = vector.multi_reduction <maximumf>, %53, %cst_21 [1] : vector<48x48xf32> to vector<48xf32>
    %55 = vector.shape_cast %54 : vector<48xf32> to vector<48x1xf32>
    %56 = vector.broadcast %55 : vector<48x1xf32> to vector<48x48xf32>
    %57 = arith.subf %53, %56 : vector<48x48xf32>
    %58 = math.exp %57 : vector<48x48xf32>
    %cst_22 = arith.constant dense<0.000000e+00> : vector<48xf32>
    %59 = vector.multi_reduction <add>, %58, %cst_22 [1] : vector<48x48xf32> to vector<48xf32>
    %60 = vector.shape_cast %59 : vector<48xf32> to vector<48x1xf32>
    %61 = tpu.reciprocal %60 {approx = true} : vector<48x1xf32> -> vector<48x1xf32>
    %62 = vector.broadcast %61 : vector<48x1xf32> to vector<48x48xf32>
    %63 = arith.mulf %58, %62 : vector<48x48xf32>
    %64 = vector.extract_strided_slice %10 {offsets = [0, 16], sizes = [48, 8], strides = [1, 1]} : vector<48x32xf32> to vector<48x8xf32>
    %cst_23 = arith.constant dense<0.000000e+00> : vector<48x8xf32>
    %65 = tpu.matmul %63, %64, %cst_23 {dimension_numbers = #tpu.dot_dimension_numbers<[1], [0], [0], [1], [0, 0, 1, 1], [], []>} : vector<48x48xf32>, vector<48x8xf32>, vector<48x8xf32> -> vector<48x8xf32>
    %66 = vector.extract_strided_slice %12 {offsets = [16, 0], sizes = [8, 32], strides = [1, 1]} : vector<32x32xf32> to vector<8x32xf32>
    %cst_24 = arith.constant dense<0.000000e+00> : vector<48x32xf32>
    %67 = tpu.matmul %65, %66, %cst_24 {dimension_numbers = #tpu.dot_dimension_numbers<[1], [0], [0], [1], [0, 0, 1, 1], [], []>} : vector<48x8xf32>, vector<8x32xf32>, vector<48x32xf32> -> vector<48x32xf32>
    %68 = arith.addf %49, %67 : vector<48x32xf32>
    %69 = vector.extract_strided_slice %8 {offsets = [0, 24], sizes = [48, 8], strides = [1, 1]} : vector<48x32xf32> to vector<48x8xf32>
    %70 = vector.extract_strided_slice %9 {offsets = [0, 24], sizes = [48, 8], strides = [1, 1]} : vector<48x32xf32> to vector<48x8xf32>
    %cst_25 = arith.constant dense<0.000000e+00> : vector<48x48xf32>
    %71 = tpu.matmul %69, %70, %cst_25 {dimension_numbers = #tpu.dot_dimension_numbers<[1], [1], [0], [0], [0, 0, 1, 0], [], []>} : vector<48x8xf32>, vector<48x8xf32>, vector<48x48xf32> -> vector<48x48xf32>
    %72 = arith.addf %71, %11 : vector<48x48xf32>
    %cst_26 = arith.constant dense<0xFF800000> : vector<48xf32>
    %73 = vector.multi_reduction <maximumf>, %72, %cst_26 [1] : vector<48x48xf32> to vector<48xf32>
    %74 = vector.shape_cast %73 : vector<48xf32> to vector<48x1xf32>
    %75 = vector.broadcast %74 : vector<48x1xf32> to vector<48x48xf32>
    %76 = arith.subf %72, %75 : vector<48x48xf32>
    %77 = math.exp %76 : vector<48x48xf32>
    %cst_27 = arith.constant dense<0.000000e+00> : vector<48xf32>
    %78 = vector.multi_reduction <add>, %77, %cst_27 [1] : vector<48x48xf32> to vector<48xf32>
    %79 = vector.shape_cast %78 : vector<48xf32> to vector<48x1xf32>
    %80 = tpu.reciprocal %79 {approx = true} : vector<48x1xf32> -> vector<48x1xf32>
    %81 = vector.broadcast %80 : vector<48x1xf32> to vector<48x48xf32>
    %82 = arith.mulf %77, %81 : vector<48x48xf32>
    %83 = vector.extract_strided_slice %10 {offsets = [0, 24], sizes = [48, 8], strides = [1, 1]} : vector<48x32xf32> to vector<48x8xf32>
    %cst_28 = arith.constant dense<0.000000e+00> : vector<48x8xf32>
    %84 = tpu.matmul %82, %83, %cst_28 {dimension_numbers = #tpu.dot_dimension_numbers<[1], [0], [0], [1], [0, 0, 1, 1], [], []>} : vector<48x48xf32>, vector<48x8xf32>, vector<48x8xf32> -> vector<48x8xf32>
    %85 = vector.extract_strided_slice %12 {offsets = [24, 0], sizes = [8, 32], strides = [1, 1]} : vector<32x32xf32> to vector<8x32xf32>
    %cst_29 = arith.constant dense<0.000000e+00> : vector<48x32xf32>
    %86 = tpu.matmul %84, %85, %cst_29 {dimension_numbers = #tpu.dot_dimension_numbers<[1], [0], [0], [1], [0, 0, 1, 1], [], []>} : vector<48x8xf32>, vector<8x32xf32>, vector<48x32xf32> -> vector<48x32xf32>
    %87 = arith.addf %68, %86 : vector<48x32xf32>
    %c0_30 = arith.constant 0 : index
    %c0_31 = arith.constant 0 : index
    %88 = vector.load %arg5[%c0_30, %c0_31] : memref<1x32xf32, #tpu.memory_space<vmem>>, vector<1x32xf32>
    %89 = vector.broadcast %88 : vector<1x32xf32> to vector<48x32xf32>
    %90 = arith.addf %87, %89 : vector<48x32xf32>
    %91 = arith.addf %90, %0 : vector<48x32xf32>
    %c0_32 = arith.constant 0 : index
    %c0_33 = arith.constant 0 : index
    %92 = vector.load %arg7[%c0_32, %c0_33] : memref<48x32xf32, #tpu.memory_space<vmem>>, vector<48x32xf32>
    tpu.vector_store %arg7[%c0_32, %c0_33], %91 {strides = array<i32>} : memref<48x32xf32, #tpu.memory_space<vmem>>, vector<48x32xf32>,
    return
  }
  func.func @transform_0(%arg0: i32) -> (i32, i32) {
    %c0_i32 = arith.constant 0 : i32
    %c0_i32_0 = arith.constant 0 : i32
    return %arg0, %c0_i32 : i32, i32
  }
  func.func @transform_1(%arg0: i32) -> (i32, i32) {
    %c0_i32 = arith.constant 0 : i32
    %c0_i32_0 = arith.constant 0 : i32
    %c0_i32_1 = arith.constant 0 : i32
    return %c0_i32, %c0_i32_0 : i32, i32
  }
  func.func @transform_2(%arg0: i32) -> (i32, i32) {
    %c0_i32 = arith.constant 0 : i32
    %c0_i32_0 = arith.constant 0 : i32
    %c0_i32_1 = arith.constant 0 : i32
    return %c0_i32, %c0_i32_0 : i32, i32
  }
  func.func @transform_3(%arg0: i32) -> (i32, i32) {
    %c0_i32 = arith.constant 0 : i32
    %c0_i32_0 = arith.constant 0 : i32
    %c0_i32_1 = arith.constant 0 : i32
    return %c0_i32, %c0_i32_0 : i32, i32
  }
  func.func @transform_4(%arg0: i32) -> (i32, i32) {
    %c0_i32 = arith.constant 0 : i32
    %c0_i32_0 = arith.constant 0 : i32
    %c0_i32_1 = arith.constant 0 : i32
    return %c0_i32, %c0_i32_0 : i32, i32
  }
  func.func @transform_5(%arg0: i32) -> (i32, i32) {
    %c0_i32 = arith.constant 0 : i32
    %c0_i32_0 = arith.constant 0 : i32
    %c0_i32_1 = arith.constant 0 : i32
    return %c0_i32, %c0_i32_0 : i32, i32
  }
  func.func @transform_6(%arg0: i32) -> (i32, i32) {
    %c0_i32 = arith.constant 0 : i32
    %c0_i32_0 = arith.constant 0 : i32
    return %arg0, %c0_i32 : i32, i32
  }
}

</mosaic_0001>

<bundles_post_ra>
// kernel: vm_attention_module_forward.3
= control target key start
LH: loop header
LB: loop body
LE: loop exit
PB: predicated region body
PF: predicated region fallthrough
CT: control target
= control target key end

     0   :  { %s623_s12 = smov 0   ;;  %s625_s13 = smov 0   ;;  %s712_s0 = inlined_call_operand.vmem [shape: f32[2,48,32], index: 0, kind: input, shape index: {}]   ;;  %s713_s1 = inlined_call_operand.vmem [shape: f32[48,1], index: 1, kind: input, shape index: {}]   ;;  %s714_s2 = inlined_call_operand.vmem [shape: f32[48,1], index: 2, kind: input, shape index: {}]   ;;  %s715_s3 = inlined_call_operand.vmem [shape: f32[2,48,32], index: 3, kind: output, shape index: {}]  }
   0x1   :  { %s627_s14 = smov 0  }
   0x2 LB: > { %s639_s15 = sadd.s32 4294967295, %s600_s14   ;;  %s642_s16 = sadd.s32 1, %s600_s14   ;;  %s600_s14 = sphi %s627_s14, %s719_s14   ;;  %s596_s13 = sphi %s625_s13, %s718_s13   ;;  %s592_s12 = sphi %s623_s12, %s717_s12  }
   0x3   : > { %s17_s17 = ssub.s32 %s600_s14, %s642_s16  ;;  %s20_s18 = sadd.s32 1, %s596_s13 }
   0x4   : > { %p18_p0 = scmp.eq.s32.totalorder %s17_s17, 0  ;;  %p27_p1 = scmp.ne.s32.totalorder %s596_s13, %s592_s12 }
   0x5   : > { %p28_p2 = scmp.eq.s32.totalorder %s600_s14, 0  ;;  %p109_p3 = scmp.eq.s32.totalorder %s639_s15, 1 }
   0x6   : > { %s652_s19 = scalar_select %p18_p0, %s596_s13, %s20_s18  }
   0x7   : > { %p29_p4 = por %p28_p2, %p27_p1  ;;  %p654_p5 = por %p109_p3, %p27_p1 }
   0x8   : > { %p533_p6 = scmp.ge.s32.totalorder %s600_s14, 2 }
   0xa   : > { %131 = sbr.rel (%p533_p6) target bundleno = 25 (0x19), region = 16 }
  0x11   : > { %134 = sbr.rel (!%p29_p4) target bundleno = 25 (0x19), region = 20  ;;  %s136_s21 = sand.u32 (%p29_p4), 1, %s596_s13  }
  0x12   : > { %s541_s22 = smul.u32 (%p29_p4), 24, %s600_s14 }
  0x13   : > { %s543_s23 = smul.u32 (%p29_p4), 48, %s136_s21 }
  0x14   : > { %s141_s26 = scalar_lea.vmem (%p29_p4), %s712_s0, %s541_s22 }
  0x15   : > { %v179_v0 = vld [vmem:[%s141_s26] sm:$0xff] (%p29_p4)  ;;  %v181_v1 = vld [vmem:[%s141_s26 + $0x8] sm:$0xff] (%p29_p4)  ;;  %v183_v2 = vld [vmem:[%s141_s26 + $0x10] sm:$0xff] (%p29_p4)  ;;  %s138_s27 = scalar_lea.vmem (%p29_p4), [#allocation2], %s543_s23 }
  0x16   : > { %180 = vst [vmem:[%s138_s27] sm:$0xff] (%p29_p4), %v179_v0  ;;  %182 = vst [vmem:[%s138_s27 + $0x8] sm:$0xff] (%p29_p4), %v181_v1  ;;  %v185_v3 = vld [vmem:[%s141_s26 + $0x30] sm:$0xff] (%p29_p4)  ;;  %v187_v4 = vld [vmem:[%s141_s26 + $0x38] sm:$0xff] (%p29_p4) }
  0x17   : > { %184 = vst [vmem:[%s138_s27 + $0x10] sm:$0xff] (%p29_p4), %v183_v2  ;;  %v189_v5 = vld [vmem:[%s141_s26 + $0x40] sm:$0xff] (%p29_p4)  ;;  %186 = vst [vmem:[%s138_s27 + $0x18] sm:$0xff] (%p29_p4), %v185_v3 }
  0x18   : > { %188 = vst [vmem:[%s138_s27 + $0x20] sm:$0xff] %v187_v4  ;;  %190 = vst [vmem:[%s138_s27 + $0x28] sm:$0xff] %v189_v5 }
  0x19 PF: > { %p535_p7 = scmp.ge.s32.totalorder %s600_s14, 1  ;;  %p213_p8 = scmp.lt.s32.totalorder %s600_s14, 3 }
  0x1b   : > { %p214_p9 = pnand %p535_p7, %p213_p8 }
  0x1c   : > { %s220_s28 = sand.u32 (!%p214_p9), 1, %s592_s12   ;;  %vm272_vm0 = vcmask (!%p214_p9), 261120   ;;  %v602_v21 = vmov (!%p214_p9), 0   ;;  %s253_s4 = smul.u32 (!%p214_p9), 3, %s639_s15 }
  0x1d   : > { %217 = sbr.rel (%p214_p9) target bundleno = 425 (0x1a9), region = 66  ;;  %571 = vset.pattern.permute.xlu1 (!%p214_p9), %v602_v21  ;;  %570 = vset.pattern.permute.xlu0 (!%p214_p9), %v602_v21 }
  0x1e   : > { %s667_s29 = smul.u32 (!%p214_p9), 48, %s220_s28  ;;  %p254_p10 = scmp.lt.s32.totalorder (!%p214_p9), %s253_s4, 5 }
  0x20   : > { %s222_s30 = scalar_lea.vmem (!%p214_p9), [#allocation2], %s667_s29  ;;  %s251_s12 = scalar_lea.vmem (!%p214_p9), [#allocation3], %s667_s29 }
  0x21   : > { %v266_v6 = vld [vmem:[%s222_s30] sm:$0xff] (!%p214_p9)  ;;  %v269_v7 = vld [vmem:[%s222_s30 + $0x18] sm:$0xff] (!%p214_p9)  ;;  %v267_v8 = vld [vmem:[%s222_s30 + $0x8] sm:$0xff] (!%p214_p9) }
  0x22   : > { %v273_v9 = vsel (!%p214_p9), %vm272_vm0, %v266_v6, 0.0  ;;  %v274_v10 = vsel (!%p214_p9), %vm272_vm0, %v269_v7, 0.0  ;;  %v270_v11 = vld [vmem:[%s222_s30 + $0x20] sm:$0xff] (!%p214_p9)  ;;  %v278_v12 = vsel (!%p214_p9), %vm272_vm0, %v267_v8, 0.0  ;;  %v268_v13 = vld [vmem:[%s222_s30 + $0x10] sm:$0xff] (!%p214_p9)  ;;  %v271_v14 = vld [vmem:[%s222_s30 + $0x28] sm:$0xff] (!%p214_p9) }
  0x23   : > { %v275_v15 = vadd.f32 (!%p214_p9), %v274_v10, %v273_v9  ;;  %v279_v16 = vsel (!%p214_p9), %vm272_vm0, %v270_v11, 0.0  ;;  %v283_v17 = vsel (!%p214_p9), %vm272_vm0, %v268_v13, 0.0  ;;  %v284_v18 = vsel (!%p214_p9), %vm272_vm0, %v271_v14, 0.0 }
  0x24   : > { %v285_v19 = vadd.f32 %v284_v18, %v283_v17  ;;  %v280_v20 = vadd.f32 %v279_v16, %v278_v12  ;;  %s721_s4 = smov (!%p254_p10, %s253_s4), 5  ;;  %s542_s14 = smul.u32 (%p654_p5), 24, %s639_s15 }
  0x25   : > { %276 = vadd.xlane.f32.xlu0 %v275_v15  ;;  %s536_s5 = sshll.u32 %s721_s4, 3 }
  0x26   : > { %286 = vadd.xlane.f32.xlu1 %v285_v19  ;;  %s257_s8 = scalar_lea.vmem %s713_s1, %s536_s5  ;;  %s263_s11 = scalar_lea.vmem %s714_s2, %s536_s5 }
  0x27   : > { %v335_v40 = vld [vmem:[%s257_s8 + $0x8] sm:$0xff]  ;;  %v336_v41 = vld [vmem:[%s257_s8 + $0x10] sm:$0xff]  ;;  %v337_v42 = vld [vmem:[%s263_s11] sm:$0xff]  ;;  %s397_s21 = scalar_lea.vmem (%p654_p5), %s715_s3, %s542_s14 }
  0x28   : > { %v334_v43 = vld [vmem:[%s257_s8] sm:$0xff]  ;;  %v338_v44 = vld [vmem:[%s263_s11 + $0x8] sm:$0xff]  ;;  %v339_v54 = vld [vmem:[%s263_s11 + $0x10] sm:$0xff] }
  0x29   : > { %281 = vadd.xlane.f32.xlu0 %v280_v20 }
  0xb2   : > { %v277_v22 = vpop.xlane.xlu0 %276 }
  0xb3   : > { %v289_v23 = vmul.f32 0.015625, %v277_v22  ;;  %v287_v45 = vpop.xlane.xlu1 %286 }
  0xb4   : > { %v291_v46 = vmul.f32 0.015625, %v287_v45 }
  0xb5   : > { %v292_v24 = vsub.f32 %v266_v6, %v289_v23  ;;  %v295_v25 = vsub.f32 %v269_v7, %v289_v23 }
  0xb6   : > { %v282_v26 = vpop.xlane.xlu0 %281  ;;  %v294_v47 = vsub.f32 %v268_v13, %v291_v46  ;;  %v297_v48 = vsub.f32 %v271_v14, %v291_v46 }
  0xb7   : > { %v290_v27 = vmul.f32 0.015625, %v282_v26  ;;  %v298_v28 = vmul.f32 %v292_v24, %v292_v24  ;;  %v301_v29 = vmul.f32 %v295_v25, %v295_v25 }
  0xb8   : > { %v300_v49 = vmul.f32 %v294_v47, %v294_v47  ;;  %v303_v50 = vmul.f32 %v297_v48, %v297_v48 }
  0xb9   : > { %v293_v30 = vsub.f32 %v267_v8, %v290_v27  ;;  %v296_v31 = vsub.f32 %v270_v11, %v290_v27  ;;  %v304_v32 = vsel %vm272_vm0, %v298_v28, 0.0  ;;  %v305_v33 = vsel %vm272_vm0, %v301_v29, 0.0 }
  0xba   : > { %v306_v34 = vadd.f32 %v305_v33, %v304_v32  ;;  %v314_v51 = vsel %vm272_vm0, %v300_v49, 0.0  ;;  %v315_v52 = vsel %vm272_vm0, %v303_v50, 0.0 }
  0xbb   : > { %v299_v35 = vmul.f32 %v293_v30, %v293_v30  ;;  %v302_v36 = vmul.f32 %v296_v31, %v296_v31  ;;  %v316_v53 = vadd.f32 %v315_v52, %v314_v51 }
  0xbc   : > { %307 = vadd.xlane.f32.xlu1 %v306_v34 }
  0xbd   : > { %v309_v37 = vsel %vm272_vm0, %v299_v35, 0.0  ;;  %v310_v38 = vsel %vm272_vm0, %v302_v36, 0.0 }
  0xbe   : > { %v311_v39 = vadd.f32 %v310_v38, %v309_v37 }
  0xc0   : > { %312 = vadd.xlane.f32.xlu0 %v311_v39 }
  0xcd   : > { %347 = vperm.xlu1 %571, %v335_v40  }
  0xd1   : > { %352 = vperm.xlu1 %571, %v336_v41  }
  0xd5   : > { %363 = vperm.xlu1 %571, %v337_v42  }
  0xd6   : > { %342 = vperm.xlu0 %570, %v334_v43  }
  0xd9   : > { %368 = vperm.xlu1 %571, %v338_v44  }
  0xfd   : > { %317 = vadd.xlane.f32.xlu1 %v316_v53 }
 0x10e   : > { %373 = vperm.xlu1 %571, %v339_v54  }
 0x149   : > { %v308_v55 = vpop.xlane.xlu1 %307 }
 0x14a   : > { %v319_v56 = vmul.f32 0.015625, %v308_v55 }
 0x14c   : > { %v322_v57 = vadd.f32 1e-05, %v319_v56 }
 0x14d   : > { %v313_v58 = vpop.xlane.xlu0 %312  ;;  %v348_v59 = vpop.permute.xlu1 %347 }
 0x14e   : > { %572 = vrsqrt.f32 %v322_v57  ;;  %v320_v60 = vmul.f32 0.015625, %v313_v58 }
 0x150   : > { %v323_v61 = vadd.f32 1e-05, %v320_v60 }
 0x151   : > { %v353_v62 = vpop.permute.xlu1 %352 }
 0x152   : > { %574 = vrsqrt.f32 %v323_v61 }
 0x155   : > { %v343_v0 = vpop.permute.xlu0 %342  ;;  %v364_v3 = vpop.permute.xlu1 %363 }
 0x158   : > { %v573_v63 = vpop.eup %572 }
 0x159   : > { %v328_v1 = vmul.f32 %v573_v63, %v292_v24  ;;  %v331_v2 = vmul.f32 %v573_v63, %v295_v25  ;;  %v369_v13 = vpop.permute.xlu1 %368 }
 0x15b   : > { %v355_v4 = vmul.f32 %v343_v0, %v328_v1  ;;  %v358_v5 = vmul.f32 %v343_v0, %v331_v2 }
 0x15c   : > { %v575_v6 = vpop.eup %574 }
 0x15d   : > { %v329_v7 = vmul.f32 %v575_v6, %v293_v30  ;;  %v332_v8 = vmul.f32 %v575_v6, %v296_v31  ;;  %v376_v9 = vadd.f32 %v364_v3, %v355_v4  ;;  %v379_v10 = vadd.f32 %v364_v3, %v358_v5 }
 0x15f   : > { %v356_v11 = vmul.f32 %v348_v59, %v329_v7  ;;  %v359_v12 = vmul.f32 %v348_v59, %v332_v8  ;;  %382 = vst.msk [vmem:[%s251_s12] sm:$0xff] %vm272_vm0, %v376_v9  ;;  %385 = vst.msk [vmem:[%s251_s12 + $0x18] sm:$0xff] %vm272_vm0, %v379_v10 }
 0x161   : > { %v377_v14 = vadd.f32 %v369_v13, %v356_v11  ;;  %v380_v15 = vadd.f32 %v369_v13, %v359_v12 }
 0x163   : > { %383 = vst.msk [vmem:[%s251_s12 + $0x8] sm:$0xff] %vm272_vm0, %v377_v14  ;;  %386 = vst.msk [vmem:[%s251_s12 + $0x20] sm:$0xff] %vm272_vm0, %v380_v15 }
 0x166   : > { %v435_v27 = vld [vmem:[%s251_s12] sm:$0xff] (%p654_p5)  ;;  %v441_v30 = vld [vmem:[%s251_s12 + $0x18] sm:$0xff] (%p654_p5) }
 0x167   : > { %436 = vst [vmem:[%s397_s21] sm:$0xff] (%p654_p5), %v435_v27  ;;  %442 = vst [vmem:[%s397_s21 + $0x30] sm:$0xff] (%p654_p5), %v441_v30 }
 0x16a   : > { %v437_v28 = vld [vmem:[%s251_s12 + $0x8] sm:$0xff] (%p654_p5)  ;;  %v443_v31 = vld [vmem:[%s251_s12 + $0x20] sm:$0xff] (%p654_p5) }
 0x16b   : > { %438 = vst [vmem:[%s397_s21 + $0x8] sm:$0xff] (%p654_p5), %v437_v28  ;;  %444 = vst [vmem:[%s397_s21 + $0x38] sm:$0xff] (%p654_p5), %v443_v31 }
 0x18a   : > { %v318_v16 = vpop.xlane.xlu1 %317 }
 0x18b   : > { %v321_v17 = vmul.f32 0.015625, %v318_v16 }
 0x18d   : > { %v324_v18 = vadd.f32 1e-05, %v321_v17 }
 0x18e   : > { %v374_v24 = vpop.permute.xlu1 %373 }
 0x18f   : > { %576 = vrsqrt.f32 %v324_v18 }
 0x199   : > { %v577_v19 = vpop.eup %576 }
 0x19a   : > { %v330_v20 = vmul.f32 %v577_v19, %v294_v47  ;;  %v333_v21 = vmul.f32 %v577_v19, %v297_v48  ;;  %394 = sbr.rel (!%p654_p5) target bundleno = 425 (0x1a9), region = 74 }
 0x19c   : > { %v357_v22 = vmul.f32 %v353_v62, %v330_v20  ;;  %v360_v23 = vmul.f32 %v353_v62, %v333_v21 }
 0x19e   : > { %v378_v25 = vadd.f32 %v374_v24, %v357_v22  ;;  %v381_v26 = vadd.f32 %v374_v24, %v360_v23 }
 0x1a0   : > { %384 = vst.msk [vmem:[%s251_s12 + $0x10] sm:$0xff] %vm272_vm0, %v378_v25  ;;  %387 = vst.msk [vmem:[%s251_s12 + $0x28] sm:$0xff] %vm272_vm0, %v381_v26 }
 0x1a7   : > { %v439_v29 = vld [vmem:[%s251_s12 + $0x10] sm:$0xff]  ;;  %v445_v32 = vld [vmem:[%s251_s12 + $0x28] sm:$0xff] }
 0x1a8   : > { %440 = vst [vmem:[%s397_s21 + $0x10] sm:$0xff] %v439_v29  ;;  %446 = vst [vmem:[%s397_s21 + $0x40] sm:$0xff] %v445_v32 }
 0x1a9 PF: > { %p10_p11 = scmp.ge.s32.totalorder %s642_s16, 4   ;;  %s717_s12 = smov %s596_s13 }
 0x1aa   : > { %s718_s13 = smov %s652_s19  ;;  %s719_s14 = smov %s642_s16 }
 0x1ab   :  { %12 = sbr.rel (!%p10_p11) target bundleno = 2 (0x2), region = 149 }

// kernel: vm_attention_module_forward.4
= control target key start
LH: loop header
LB: loop body
LE: loop exit
PB: predicated region body
PF: predicated region fallthrough
CT: control target
= control target key end

     0   :  { %s3232_s21 = smov 0   ;;  %s3776_s0 = inlined_call_operand.vmem [shape: f32[96,32], index: 0, kind: input, shape index: {}]   ;;  %s3777_s1 = inlined_call_operand.vmem [shape: f32[32,96], index: 1, kind: input, shape index: {}]   ;;  %s3778_s2 = inlined_call_operand.vmem [shape: f32[1,96], index: 2, kind: input, shape index: {}]   ;;  %s3779_s3 = inlined_call_operand.vmem [shape: f32[32,32], index: 3, kind: input, shape index: {}]   ;;  %s3780_s4 = inlined_call_operand.vmem [shape: f32[1,32], index: 4, kind: input, shape index: {}]   ;;  %s3781_s5 = inlined_call_operand.vmem [shape: f32[48,48], index: 5, kind: input, shape index: {}]   ;;  %s3782_s6 = inlined_call_operand.vmem [shape: f32[96,32], index: 6, kind: output, shape index: {}]  }
   0x1 LB: > { %s2309_s22 = sadd.s32 4294967295, %s3184_s21   ;;  %p2313_p0 = scmp.ge.s32.totalorder %s3184_s21, 1  ;;  %s3184_s21 = sphi %s3232_s21, %s16_s21  }
   0x2   : > { %p213_p1 = scmp.lt.s32.totalorder %s3184_s21, 3 }
   0x4   : > { %p214_p2 = pnand %p2313_p0, %p213_p1 }
   0x5   : > { %v261_v0 = vld [vmem:[%s3777_s1] sm:$0xff] (!%p214_p2)  ;;  %v262_v1 = vld [vmem:[%s3777_s1 + $0x8] sm:$0xff] (!%p214_p2)  ;;  %v263_v2 = vld [vmem:[%s3777_s1 + $0x10] sm:$0xff] (!%p214_p2)  ;;  %s243_s29 = smul.u32 (!%p214_p2), 6, %s2309_s22  ;;  %vm272_vm0 = vcmask (!%p214_p2), 261120   ;;  %vm420_vm1 = vcmask (!%p214_p2), 64512  }
   0x6   : > { %217 = sbr.rel (%p214_p2) target bundleno = 2517 (0x9d5), region = 44  ;;  %v2785_v3 = vpack.c.bf16 (!%p214_p2), %v262_v1, %v261_v0  ;;  %v264_v4 = vld [vmem:[%s3777_s1 + $0x18] sm:$0xff] (!%p214_p2)  ;;  %v2316_v12 = vld [vmem:[%s3778_s2] ss:$0 sm:$0xff] (!%p214_p2)  ;;  %s3186_s14 = smov (!%p214_p2), 96   ;;  %vm3296_vm2 = vmpackc.low (!%p214_p2), %vm420_vm1, %vm420_vm1  ;;  %vm546_vm3 = vcmask (!%p214_p2), 392192  }
   0x7   : > { %v2789_v5 = vpack.c.bf16 (!%p214_p2), %v264_v4, %v263_v2  ;;  %p244_p3 = scmp.lt.s32.totalorder (!%p214_p2), %s243_s29, 11  ;;  %s3187_s15 = smov (!%p214_p2), 64   ;;  %v3335_v55 = vld [vmem:[%s3781_s5 + $0x8] sm:$0xff] (!%p214_p2)  ;;  %v3340_v56 = vld [vmem:[%s3781_s5] sm:$0xff] (!%p214_p2)  ;;  %v3347_v61 = vld [vmem:[%s3781_s5 + $0x18] sm:$0xff] (!%p214_p2) }
   0x8   : > { %2786 = vmatprep.subr.bf16.mxu0 (!%p214_p2), %v2785_v3  ;;  %v3353_v63 = vld [vmem:[%s3781_s5 + $0x10] sm:$0xff] (!%p214_p2)  ;;  %s3188_s30 = smov (!%p214_p2), 88   ;;  %s3189_s7 = smov (!%p214_p2), 120  }
   0x9   : > { %2788 = vmatpush3.bf16.msra.mxu0 (!%p214_p2), %v2785_v3  ;;  %s3190_s9 = smov (!%p214_p2), 80   ;;  %s3191_s10 = smov (!%p214_p2), 112  }
   0xa   : > { %2790 = vmatprep.subr.bf16.mxu0 (!%p214_p2), %v2789_v5  ;;  %s3192_s12 = smov (!%p214_p2), 56   ;;  %s3193_s13 = smov (!%p214_p2), 72  }
   0xb   : > { %s3196_s23 = smov (!%p214_p2), 40  }
   0xd   : > { %s3786_s29 = smov (!%p244_p3, %s243_s29), 11  ;;  %2792 = vmatpush3.bf16.msra.mxu0 %v2789_v5  ;;  %v3361_v5 = vld [vmem:[%s3781_s5 + $0x28] sm:$0xff] }
   0xe   : > { %s2314_s8 = sshll.u32 %s3786_s29, 3 }
   0xf   : > { %s3260_s11 = scalar_lea.vmem %s3776_s0, %s2314_s8 }
  0x10   : > { %v255_v6 = vld [vmem:[%s3260_s11] sm:$0xff]  ;;  %v256_v7 = vld [vmem:[%s3260_s11 + $0x8] sm:$0xff]  ;;  %v257_v8 = vld [vmem:[%s3260_s11 + $0x10] sm:$0xff] }
  0x11   : > { %2564 = vmatprep.mubr.msk.f32.mxu0 %vm272_vm0, %v255_v6  ;;  %v258_v9 = vld [vmem:[%s3260_s11 + $0x18] sm:$0xff]  ;;  %v259_v10 = vld [vmem:[%s3260_s11 + $0x20] sm:$0xff]  ;;  %v260_v11 = vld [vmem:[%s3260_s11 + $0x28] sm:$0xff] }
  0x12   : > { %2565 = vmatmul.mubr.msk.f32.vlgmr.msra.gmra.mrb[0].mxu0 %vm272_vm0, %v256_v7  ;;  %v3366_v6 = vld [vmem:[%s3781_s5 + $0x20] sm:$0xff] }
  0x13   : > { %2567 = vmatprep.mubr.msk.f32.mxu0 %vm272_vm0, %v257_v8 }
  0x16   : > { %2568 = vmatmul.mubr.msk.f32.gmra.mrb[2].mxu0 %vm272_vm0, %v258_v9 }
  0x17   : > { %2570 = vmatprep.mubr.msk.f32.mxu0 %vm272_vm0, %v259_v10 }
  0x1a   : > { %2571 = vmatmul.mubr.msk.f32.gmra.mrb[4].mxu0 %vm272_vm0, %v260_v11 }
  0xe5   : > { %v2566_v13 = vpop.f32.mrb[0].mxu0 }
  0xe6   : > { %v363_v14 = vadd.f32 %v2566_v13, %v2316_v12  ;;  %v357_v15 = vpop.f32.mrb[1].mxu0 }
  0xe7   : > { %v358_v16 = vadd.f32 %v2316_v12, %v357_v15 }
  0xe8   : > { %v3312_v50 = vmul.f32 0.35355338, %v363_v14 }
  0xe9   : > { %v2569_v17 = vpop.f32.mrb[2].mxu0  ;;  %v3277_v18 = vpack.i.bf16 %v363_v14, %v358_v16  ;;  %v3279_v19 = vmul.f32 0.35355338, %v358_v16 }
  0xea   : > { %v373_v20 = vadd.f32 %v2569_v17, %v2316_v12  ;;  %v367_v21 = vpop.f32.mrb[3].mxu0 }
  0xeb   : > { %v368_v22 = vadd.f32 %v2316_v12, %v367_v21  ;;  %2957 = vrot.lane.b32.xlu0 %v3277_v18, %s3186_s14  ;;  %2585 = vmatprep.mubr.msk.f32.mxu1 %vm420_vm1, %v3279_v19 }
  0xec   : > { %v3320_v52 = vmul.f32 0.35355338, %v373_v20 }
  0xed   : > { %v2572_v23 = vpop.f32.mrb[4].mxu0  ;;  %v3284_v24 = vpack.i.bf16 %v373_v20, %v368_v22  ;;  %v3314_v51 = vmul.f32 0.35355338, %v368_v22 }
  0xee   : > { %v383_v25 = vadd.f32 %v2572_v23, %v2316_v12  ;;  %v377_v26 = vpop.f32.mrb[5].mxu0 }
  0xef   : > { %v378_v27 = vadd.f32 %v2316_v12, %v377_v26  ;;  %2962 = vrot.lane.b32.xlu0 %v3284_v24, %s3186_s14 }
  0xf0   : > { %v3328_v54 = vmul.f32 0.35355338, %v383_v25 }
  0xf1   : > { %v3287_v28 = vpack.i.bf16 %v383_v25, %v378_v27  ;;  %v3322_v53 = vmul.f32 0.35355338, %v378_v27 }
  0xf3   : > { %2967 = vrot.lane.b32.xlu1 %v3287_v28, %s3186_s14  ;;  %2972 = vrot.lane.b32.xlu0 %v3277_v18, %s3187_s15  ;;  %s3194_s14 = smov 104  }
  0xf7   : > { %2977 = vrot.lane.b32.xlu1 %v3284_v24, %s3187_s15 }
 0x15d   : > { %v2958_v29 = vpop.permute.xlu0 %2957 }
 0x15e   : > { %v2960_v30 = vunpack.i.h.bf16 %v2958_v29  ;;  %v2959_v31 = vunpack.i.l.bf16 %v2958_v29 }
 0x160   : > { %v2793_v33 = vpack.c.bf16 %v2960_v30, %v2959_v31 }
 0x161   : > { %v2963_v34 = vpop.permute.xlu0 %2962 }
 0x162   : > { %v2965_v35 = vunpack.i.h.bf16 %v2963_v34  ;;  %v2964_v36 = vunpack.i.l.bf16 %v2963_v34  ;;  %2795 = vmatprep.subr.msk.bf16.mxu1 %vm3296_vm2, %v2793_v33 }
 0x163   : > { %2798 = vmatpush3.bf16.xpose.msk.msra.mxu1 %vm3296_vm2, %v2793_v33 }
 0x164   : > { %v2799_v37 = vpack.c.bf16 %v2965_v35, %v2964_v36 }
 0x165   : > { %v2968_v38 = vpop.permute.xlu1 %2967  ;;  %v2973_v39 = vpop.permute.xlu0 %2972 }
 0x166   : > { %v2970_v40 = vunpack.i.h.bf16 %v2968_v38  ;;  %v2969_v41 = vunpack.i.l.bf16 %v2968_v38  ;;  %v2975_v42 = vunpack.i.h.bf16 %v2973_v39  ;;  %v2974_v43 = vunpack.i.l.bf16 %v2973_v39  ;;  %2801 = vmatprep.subr.msk.bf16.mxu1 %vm3296_vm2, %v2799_v37 }
 0x168   : > { %v2805_v44 = vpack.c.bf16 %v2970_v40, %v2969_v41  ;;  %v2811_v45 = vpack.c.bf16 %v2975_v42, %v2974_v43 }
 0x169   : > { %v2978_v46 = vpop.permute.xlu1 %2977 }
 0x16a   : > { %v2980_v47 = vunpack.i.h.bf16 %v2978_v46  ;;  %v2979_v48 = vunpack.i.l.bf16 %v2978_v46  ;;  %2812 = vmatprep.subr.bf16.mxu0 %v2811_v45 }
 0x16b   : > { %2804 = vmatpush3.bf16.xpose.msk.msra.mxu1 %vm3296_vm2, %v2799_v37  ;;  %2814 = vmatpush3.bf16.msra.mxu0 %v2811_v45 }
 0x16c   : > { %v2815_v49 = vpack.c.bf16 %v2980_v47, %v2979_v48  ;;  %2807 = vmatprep.subr.msk.bf16.mxu1 %vm3296_vm2, %v2805_v44 }
 0x16e   : > { %2816 = vmatprep.subr.bf16.mxu0 %v2815_v49 }
 0x16f   : > { %2818 = vmatpush3.bf16.msra.mxu0 %v2815_v49 }
 0x173   : > { %2810 = vmatpush3.bf16.xpose.msk.msra.mxu1 %vm3296_vm2, %v2805_v44 }
 0x17a   : > { %2586 = vmatmul.mubr.msk.f32.vlgmr.msra.gmra.mrb[0].mxu1 %vm420_vm1, %v3312_v50 }
 0x17b   : > { %2588 = vmatprep.mubr.msk.f32.mxu1 %vm420_vm1, %v3314_v51 }
 0x17e   : > { %2589 = vmatmul.mubr.msk.f32.gmra.mrb[2].mxu1 %vm420_vm1, %v3320_v52 }
 0x17f   : > { %2591 = vmatprep.mubr.msk.f32.mxu1 %vm420_vm1, %v3322_v53 }
 0x182   : > { %2592 = vmatmul.mubr.msk.f32.gmra.mrb[4].mxu1 %vm420_vm1, %v3328_v54 }
 0x24d   : > { %v2587_v57 = vpop.f32.mrb[0].mxu1 }
 0x24e   : > { %v523_v58 = vadd.f32 %v2587_v57, %v3335_v55  ;;  %v517_v59 = vpop.f32.mrb[1].mxu1 }
 0x24f   : > { %v518_v60 = vadd.f32 %v517_v59, %v3340_v56 }
 0x250   : > { %v550_v62 = vsel %vm546_vm3, %v523_v58, -inf }
 0x251   : > { %551 = vmax.xlane.f32.xlu0 %v550_v62  ;;  %v2590_v0 = vpop.f32.mrb[2].mxu1  ;;  %v547_v1 = vsel %vm546_vm3, %v518_v60, -inf }
 0x252   : > { %v533_v2 = vadd.f32 %v2590_v0, %v3347_v61  ;;  %v527_v3 = vpop.f32.mrb[3].mxu1  ;;  %548 = vmax.xlane.f32.xlu1 %v547_v1 }
 0x253   : > { %v528_v4 = vadd.f32 %v527_v3, %v3353_v63 }
 0x254   : > { %v556_v7 = vsel %vm546_vm3, %v533_v2, -inf }
 0x255   : > { %v2593_v8 = vpop.f32.mrb[4].mxu1  ;;  %v553_v9 = vsel %vm546_vm3, %v528_v4, -inf }
 0x256   : > { %v543_v10 = vadd.f32 %v2593_v8, %v3361_v5  ;;  %v537_v11 = vpop.f32.mrb[5].mxu1  ;;  %554 = vmax.xlane.f32.xlu0 %v553_v9  ;;  %557 = vmax.xlane.f32.xlu1 %v556_v7 }
 0x257   : > { %v538_v12 = vadd.f32 %v537_v11, %v3366_v6 }
 0x258   : > { %v562_v13 = vsel %vm546_vm3, %v543_v10, -inf }
 0x259   : > { %v559_v14 = vsel %vm546_vm3, %v538_v12, -inf }
 0x25a   : > { %560 = vmax.xlane.f32.xlu0 %v559_v14  ;;  %563 = vmax.xlane.f32.xlu1 %v562_v13 }
 0x26b   : > { %2987 = vrot.lane.b32.xlu1 %v3277_v18, %s3188_s30 }
 0x270   : > { %2982 = vrot.lane.b32.xlu0 %v3287_v28, %s3187_s15  ;;  %s3195_s15 = smov 48  }
 0x2de   : > { %v552_v15 = vpop.xlane.xlu0 %551 }
 0x2df   : > { %v566_v16 = vsub.f32 %v523_v58, %v552_v15  ;;  %v549_v17 = vpop.xlane.xlu1 %548 }
 0x2e0   : > { %v565_v20 = vsub.f32 %v518_v60, %v549_v17 }
 0x2e1   : > { %v573_v21 = vmul.f32 1.442695, %v566_v16 }
 0x2e2   : > { %v571_v22 = vmul.f32 1.442695, %v565_v20 }
 0x2e3   : > { %3076 = vpow2.f32 %v573_v21  ;;  %v555_v23 = vpop.xlane.xlu0 %554  ;;  %v558_v25 = vpop.xlane.xlu1 %557 }
 0x2e4   : > { %3078 = vpow2.f32 %v571_v22  ;;  %v567_v42 = vsub.f32 %v528_v4, %v555_v23  ;;  %v568_v43 = vsub.f32 %v533_v2, %v558_v25 }
 0x2e6   : > { %v575_v44 = vmul.f32 1.442695, %v567_v42  ;;  %v577_v46 = vmul.f32 1.442695, %v568_v43 }
 0x2e7   : > { %v561_v26 = vpop.xlane.xlu0 %560  ;;  %v564_v27 = vpop.xlane.xlu1 %563 }
 0x2e8   : > { %v570_v45 = vsub.f32 %v543_v10, %v564_v27  ;;  %3080 = vpow2.f32 %v575_v44  ;;  %v569_v47 = vsub.f32 %v538_v12, %v561_v26 }
 0x2e9   : > { %3082 = vpow2.f32 %v577_v46 }
 0x2ea   : > { %v581_v48 = vmul.f32 1.442695, %v570_v45  ;;  %v579_v49 = vmul.f32 1.442695, %v569_v47 }
 0x2eb   : > { %v2983_v29 = vpop.permute.xlu0 %2982  ;;  %v2988_v30 = vpop.permute.xlu1 %2987 }
 0x2ec   : > { %v2985_v31 = vunpack.i.h.bf16 %v2983_v29  ;;  %v2984_v33 = vunpack.i.l.bf16 %v2983_v29  ;;  %v2990_v34 = vunpack.i.h.bf16 %v2988_v30  ;;  %v2989_v36 = vunpack.i.l.bf16 %v2988_v30 }
 0x2ed   : > { %v3378_v35 = vpop.eup %3076  ;;  %3084 = vpow2.f32 %v581_v48 }
 0x2ee   : > { %v3380_v37 = vpop.eup %3078  ;;  %v2819_v38 = vpack.c.bf16 %v2985_v31, %v2984_v33  ;;  %v586_v39 = vsel %vm546_vm3, %v3378_v35, 0.0  ;;  %v3386_v41 = vpack.c.bf16 %v2990_v34, %v2989_v36  ;;  %3086 = vpow2.f32 %v579_v49 }
 0x2ef   : > { %587 = vadd.xlane.f32.xlu1 %v586_v39  ;;  %v583_v40 = vsel %vm546_vm3, %v3380_v37, 0.0 }
 0x2f0   : > { %2820 = vmatprep.subr.bf16.mxu0 %v2819_v38  ;;  %584 = vadd.xlane.f32.xlu0 %v583_v40 }
 0x2f1   : > { %2822 = vmatpush3.bf16.msra.mxu0 %v2819_v38 }
 0x2f2   : > { %2825 = vmatprep.subr.msk.bf16.mxu0 %vm3296_vm2, %v3386_v41  ;;  %v3395_v57 = vpop.eup %3080 }
 0x2f3   : > { %v3397_v58 = vpop.eup %3082  ;;  %v589_v59 = vsel %vm546_vm3, %v3395_v57, 0.0 }
 0x2f4   : > { %v592_v62 = vsel %vm546_vm3, %v3397_v58, 0.0 }
 0x2f7   : > { %v3401_v60 = vpop.eup %3084 }
 0x2f8   : > { %v598_v0 = vsel %vm546_vm3, %v3401_v60, 0.0  ;;  %v3407_v1 = vpop.eup %3086 }
 0x2f9   : > { %v595_v2 = vsel %vm546_vm3, %v3407_v1, 0.0 }
 0x300   : > { %744 = vrot.lane.b32.xlu1 %v3279_v19, %s3189_s7 }
 0x306   : > { %2992 = vrot.lane.b32.xlu0 %v3284_v24, %s3188_s30 }
 0x324   : > { %590 = vadd.xlane.f32.xlu1 %v589_v59 }
 0x325   : > { %593 = vadd.xlane.f32.xlu0 %v592_v62 }
 0x328   : > { %599 = vadd.xlane.f32.xlu1 %v598_v0 }
 0x32c   : > { %596 = vadd.xlane.f32.xlu1 %v595_v2 }
 0x33b   : > { %2997 = vrot.lane.b32.xlu0 %v3287_v28, %s3188_s30 }
 0x33d   : > { %748 = vrot.lane.b32.xlu1 %v3314_v51, %s3189_s7 }
 0x33f   : > { %746 = vrot.lane.b32.xlu0 %v3312_v50, %s3189_s7 }
 0x341   : > { %752 = vrot.lane.b32.xlu1 %v3322_v53, %s3189_s7 }
 0x343   : > { %750 = vrot.lane.b32.xlu0 %v3320_v52, %s3189_s7 }
 0x345   : > { %3002 = vrot.lane.b32.xlu1 %v3277_v18, %s3190_s9 }
 0x347   : > { %754 = vrot.lane.b32.xlu0 %v3328_v54, %s3189_s7  ;;  %s253_s7 = scalar_lea.vmem %s3782_s6, %s2314_s8 }
 0x349   : > { %3012 = vrot.lane.b32.xlu1 %v3287_v28, %s3190_s9 }
 0x34b   : > { %3007 = vrot.lane.b32.xlu0 %v3284_v24, %s3190_s9 }
 0x34d   : > { %1312 = vrot.lane.b32.xlu1 %v3312_v50, %s3191_s10 }
 0x34f   : > { %1310 = vrot.lane.b32.xlu0 %v3279_v19, %s3191_s10 }
 0x351   : > { %1316 = vrot.lane.b32.xlu1 %v3320_v52, %s3191_s10 }
 0x353   : > { %1314 = vrot.lane.b32.xlu0 %v3314_v51, %s3191_s10 }
 0x355   : > { %1320 = vrot.lane.b32.xlu1 %v3328_v54, %s3191_s10 }
 0x357   : > { %1318 = vrot.lane.b32.xlu0 %v3322_v53, %s3191_s10 }
 0x37c   : > { %v588_v3 = vpop.xlane.xlu1 %587 }
 0x37d   : > { %3088 = vrcp.f32 %v588_v3  ;;  %v585_v4 = vpop.xlane.xlu0 %584 }
 0x37e   : > { %3090 = vrcp.f32 %v585_v4 }
 0x380   : > { %v745_v15 = vpop.permute.xlu1 %744 }
 0x381   : > { %v2993_v7 = vpop.permute.xlu0 %2992 }
 0x382   : > { %v2995_v10 = vunpack.i.h.bf16 %v2993_v7  ;;  %v2994_v11 = vunpack.i.l.bf16 %v2993_v7 }
 0x384   : > { %v2829_v14 = vpack.c.bf16 %v2995_v10, %v2994_v11 }
 0x387   : > { %v3089_v8 = vpop.eup %3088 }
 0x388   : > { %v3091_v9 = vpop.eup %3090  ;;  %v608_v13 = vmul.f32 %v3089_v8, %v3378_v35 }
 0x389   : > { %v607_v12 = vmul.f32 %v3091_v9, %v3380_v37 }
 0x38b   : > { %2606 = vmatprep.mubr.msk.f32.mxu0 %vm546_vm3, %v607_v12 }
 0x38c   : > { %2607 = vmatmul.mubr.msk.f32.vlgmr.msra.gmra.mrb[6].mxu0 %vm546_vm3, %v608_v13 }
 0x38d   : > { %2828 = vmatpush3.bf16.xpose.msk.msra.mxu0 %vm3296_vm2, %v3386_v41 }
 0x38e   : > { %2831 = vmatprep.subr.msk.bf16.mxu0 %vm3296_vm2, %v2829_v14 }
 0x395   : > { %2834 = vmatpush3.bf16.xpose.msk.msra.mxu0 %vm3296_vm2, %v2829_v14 }
 0x3b1   : > { %v591_v16 = vpop.xlane.xlu1 %590 }
 0x3b2   : > { %3092 = vrcp.f32 %v591_v16  ;;  %v594_v17 = vpop.xlane.xlu0 %593 }
 0x3b3   : > { %3094 = vrcp.f32 %v594_v17 }
 0x3b5   : > { %v600_v20 = vpop.xlane.xlu1 %599 }
 0x3b6   : > { %v2998_v21 = vpop.permute.xlu0 %2997  ;;  %3096 = vrcp.f32 %v600_v20 }
 0x3b7   : > { %v3000_v22 = vunpack.i.h.bf16 %v2998_v21  ;;  %v2999_v23 = vunpack.i.l.bf16 %v2998_v21 }
 0x3b9   : > { %v2835_v25 = vpack.c.bf16 %v3000_v22, %v2999_v23  ;;  %v597_v26 = vpop.xlane.xlu1 %596 }
 0x3ba   : > { %3098 = vrcp.f32 %v597_v26  ;;  %v747_v27 = vpop.permute.xlu0 %746 }
 0x3bb   : > { %2837 = vmatprep.subr.msk.bf16.mxu0 %vm3296_vm2, %v2835_v25 }
 0x3bc   : > { %v3093_v29 = vpop.eup %3092  ;;  %2840 = vmatpush3.bf16.xpose.msk.msra.mxu0 %vm3296_vm2, %v2835_v25 }
 0x3bd   : > { %v3095_v30 = vpop.eup %3094  ;;  %v749_v31 = vpop.permute.xlu1 %748  ;;  %v609_v33 = vmul.f32 %v3093_v29, %v3395_v57 }
 0x3be   : > { %v751_v34 = vpop.permute.xlu0 %750  ;;  %v610_v35 = vmul.f32 %v3095_v30, %v3397_v58 }
 0x3bf   : > { %2609 = vmatprep.mubr.msk.f32.mxu0 %vm546_vm3, %v609_v33 }
 0x3c0   : > { %2610 = vmatmul.mubr.msk.f32.gmra.mrb[8].mxu0 %vm546_vm3, %v610_v35  ;;  %v3097_v38 = vpop.eup %3096 }
 0x3c1   : > { %v753_v36 = vpop.permute.xlu1 %752  ;;  %v612_v45 = vmul.f32 %v3097_v38, %v3401_v60 }
 0x3c2   : > { %v755_v37 = vpop.permute.xlu0 %754 }
 0x3c4   : > { %v3099_v39 = vpop.eup %3098 }
 0x3c5   : > { %v3003_v40 = vpop.permute.xlu1 %3002  ;;  %v611_v41 = vmul.f32 %v3099_v39, %v3407_v1 }
 0x3c6   : > { %v3005_v42 = vunpack.i.h.bf16 %v3003_v40  ;;  %v3004_v43 = vunpack.i.l.bf16 %v3003_v40  ;;  %v3008_v44 = vpop.permute.xlu0 %3007 }
 0x3c7   : > { %2612 = vmatprep.mubr.msk.f32.mxu0 %vm546_vm3, %v611_v41  ;;  %v3010_v47 = vunpack.i.h.bf16 %v3008_v44  ;;  %v3009_v48 = vunpack.i.l.bf16 %v3008_v44 }
 0x3c8   : > { %v2853_v46 = vpack.c.bf16 %v3005_v42, %v3004_v43  ;;  %2613 = vmatmul.mubr.msk.f32.gmra.mrb[10].mxu0 %vm546_vm3, %v612_v45 }
 0x3c9   : > { %2627 = vmatprep.mubr.msk.f32.mxu0 %vm420_vm1, %v745_v15  ;;  %v2859_v49 = vpack.c.bf16 %v3010_v47, %v3009_v48  ;;  %v3013_v57 = vpop.permute.xlu1 %3012 }
 0x3ca   : > { %2855 = vmatprep.subr.msk.bf16.mxu0 %vm3296_vm2, %v2853_v46  ;;  %v3015_v58 = vunpack.i.h.bf16 %v3013_v57  ;;  %v3014_v59 = vunpack.i.l.bf16 %v3013_v57  ;;  %v1311_v62 = vpop.permute.xlu0 %1310 }
 0x3cc   : > { %2628 = vmatmul.mubr.msk.f32.vlgmr.msra.gmra.mrb[12].mxu0 %vm420_vm1, %v747_v27  ;;  %v2865_v60 = vpack.c.bf16 %v3015_v58, %v3014_v59 }
 0x3cd   : > { %2858 = vmatpush3.bf16.xpose.msk.msra.mxu0 %vm3296_vm2, %v2853_v46  ;;  %2630 = vmatprep.mubr.msk.f32.mxu0 %vm420_vm1, %v749_v31  ;;  %v1313_v0 = vpop.permute.xlu1 %1312 }
 0x3ce   : > { %2861 = vmatprep.subr.msk.bf16.mxu0 %vm3296_vm2, %v2859_v49  ;;  %v1315_v1 = vpop.permute.xlu0 %1314 }
 0x3d0   : > { %2631 = vmatmul.mubr.msk.f32.gmra.mrb[14].mxu0 %vm420_vm1, %v751_v34 }
 0x3d1   : > { %2633 = vmatprep.mubr.msk.f32.mxu0 %vm420_vm1, %v753_v36  ;;  %v1317_v2 = vpop.permute.xlu1 %1316 }
 0x3d2   : > { %v1319_v3 = vpop.permute.xlu0 %1318 }
 0x3d4   : > { %2634 = vmatmul.mubr.msk.f32.gmra.mrb[16].mxu0 %vm420_vm1, %v755_v37 }
 0x3d5   : > { %2864 = vmatpush3.bf16.xpose.msk.msra.mxu0 %vm3296_vm2, %v2859_v49  ;;  %2691 = vmatprep.mubr.msk.f32.mxu0 %vm420_vm1, %v1311_v62  ;;  %v1321_v4 = vpop.permute.xlu1 %1320 }
 0x3d6   : > { %2867 = vmatprep.subr.msk.bf16.mxu0 %vm3296_vm2, %v2865_v60 }
 0x3dd   : > { %2870 = vmatpush3.bf16.xpose.msk.msra.mxu0 %vm3296_vm2, %v2865_v60 }
 0x3e4   : > { %2692 = vmatmul.mubr.msk.f32.vlgmr.msra.gmra.mrb[18].mxu0 %vm420_vm1, %v1313_v0 }
 0x3e5   : > { %2694 = vmatprep.mubr.msk.f32.mxu0 %vm420_vm1, %v1315_v1 }
 0x3e8   : > { %2695 = vmatmul.mubr.msk.f32.gmra.mrb[20].mxu0 %vm420_vm1, %v1317_v2 }
 0x3e9   : > { %2697 = vmatprep.mubr.msk.f32.mxu0 %vm420_vm1, %v1319_v3 }
 0x3ec   : > { %2698 = vmatmul.mubr.msk.f32.gmra.mrb[22].mxu0 %vm420_vm1, %v1321_v4 }
 0x45f   : > { %v3479_v7 = vpop.f32.mrb[6].mxu0 }
 0x460   : > { %v3481_v8 = vpop.f32.mrb[7].mxu0 }
 0x493   : > { %v3483_v9 = vpop.f32.mrb[8].mxu0 }
 0x494   : > { %v3485_v10 = vpop.f32.mrb[9].mxu0 }
 0x49b   : > { %v3487_v11 = vpop.f32.mrb[10].mxu0 }
 0x49c   : > { %v3489_v12 = vpop.f32.mrb[11].mxu0 }
 0x49f   : > { %v2629_v13 = vpop.f32.mrb[12].mxu0 }
 0x4a0   : > { %v864_v14 = vadd.f32 %v2629_v13, %v3335_v55  ;;  %v858_v15 = vpop.f32.mrb[13].mxu0 }
 0x4a1   : > { %v859_v16 = vadd.f32 %v858_v15, %v3340_v56 }
 0x4a2   : > { %v890_v17 = vsel %vm546_vm3, %v864_v14, -inf }
 0x4a3   : > { %891 = vmax.xlane.f32.xlu1 %v890_v17  ;;  %v2632_v20 = vpop.f32.mrb[14].mxu0  ;;  %v887_v21 = vsel %vm546_vm3, %v859_v16, -inf }
 0x4a4   : > { %v868_v22 = vpop.f32.mrb[15].mxu0  ;;  %888 = vmax.xlane.f32.xlu0 %v887_v21  ;;  %v874_v25 = vadd.f32 %v2632_v20, %v3347_v61 }
 0x4a5   : > { %v869_v23 = vadd.f32 %v868_v22, %v3353_v63 }
 0x4a6   : > { %v896_v34 = vsel %vm546_vm3, %v874_v25, -inf }
 0x4a7   : > { %v2635_v26 = vpop.f32.mrb[16].mxu0  ;;  %v893_v27 = vsel %vm546_vm3, %v869_v23, -inf }
 0x4a8   : > { %v878_v29 = vpop.f32.mrb[17].mxu0  ;;  %894 = vmax.xlane.f32.xlu0 %v893_v27  ;;  %v884_v31 = vadd.f32 %v2635_v26, %v3361_v5 }
 0x4a9   : > { %v879_v30 = vadd.f32 %v878_v29, %v3366_v6 }
 0x4aa   : > { %v902_v35 = vsel %vm546_vm3, %v884_v31, -inf }
 0x4ab   : > { %v899_v33 = vsel %vm546_vm3, %v879_v30, -inf }
 0x4ac   : > { %900 = vmax.xlane.f32.xlu1 %v899_v33  ;;  %897 = vmax.xlane.f32.xlu0 %v896_v34 }
 0x4b0   : > { %903 = vmax.xlane.f32.xlu0 %v902_v35 }
 0x4b7   : > { %v3503_v36 = vpop.f32.mrb[18].mxu0 }
 0x4b8   : > { %v3505_v37 = vpop.f32.mrb[19].mxu0  ;;  %v3556_v34 = vadd.f32 %v3503_v36, %v3335_v55 }
 0x4b9   : > { %v3560_v35 = vadd.f32 %v3505_v37, %v3340_v56 }
 0x4bb   : > { %v3507_v38 = vpop.f32.mrb[20].mxu0 }
 0x4bc   : > { %v3509_v39 = vpop.f32.mrb[21].mxu0 }
 0x4bd   : > { %3017 = vrot.lane.b32.xlu1 %v3277_v18, %s3192_s12 }
 0x4bf   : > { %v3513_v40 = vpop.f32.mrb[22].mxu0 }
 0x4c0   : > { %v3515_v41 = vpop.f32.mrb[23].mxu0  ;;  %v3584_v37 = vadd.f32 %v3513_v40, %v3361_v5 }
 0x530   : > { %v892_v42 = vpop.xlane.xlu1 %891 }
 0x531   : > { %v906_v43 = vsub.f32 %v864_v14, %v892_v42  ;;  %v889_v44 = vpop.xlane.xlu0 %888 }
 0x532   : > { %v905_v45 = vsub.f32 %v859_v16, %v889_v44 }
 0x533   : > { %v913_v46 = vmul.f32 1.442695, %v906_v43 }
 0x534   : > { %v911_v47 = vmul.f32 1.442695, %v905_v45 }
 0x535   : > { %3100 = vpow2.f32 %v913_v46  ;;  %v895_v48 = vpop.xlane.xlu0 %894 }
 0x536   : > { %3102 = vpow2.f32 %v911_v47  ;;  %v907_v49 = vsub.f32 %v869_v23, %v895_v48 }
 0x538   : > { %v915_v57 = vmul.f32 1.442695, %v907_v49 }
 0x539   : > { %v901_v58 = vpop.xlane.xlu1 %900  ;;  %v898_v59 = vpop.xlane.xlu0 %897 }
 0x53a   : > { %3104 = vpow2.f32 %v915_v57  ;;  %v909_v60 = vsub.f32 %v879_v30, %v901_v58  ;;  %v908_v62 = vsub.f32 %v874_v25, %v898_v59 }
 0x53c   : > { %v919_v0 = vmul.f32 1.442695, %v909_v60  ;;  %v917_v1 = vmul.f32 1.442695, %v908_v62 }
 0x53d   : > { %v3018_v2 = vpop.permute.xlu1 %3017  ;;  %v904_v3 = vpop.xlane.xlu0 %903 }
 0x53e   : > { %3106 = vpow2.f32 %v919_v0  ;;  %v3020_v4 = vunpack.i.h.bf16 %v3018_v2  ;;  %v3019_v13 = vunpack.i.l.bf16 %v3018_v2  ;;  %v910_v14 = vsub.f32 %v884_v31, %v904_v3 }
 0x53f   : > { %v3517_v15 = vpop.eup %3100  ;;  %3108 = vpow2.f32 %v917_v1 }
 0x540   : > { %v3519_v16 = vpop.eup %3102  ;;  %v2841_v17 = vpack.c.bf16 %v3020_v4, %v3019_v13  ;;  %v921_v20 = vmul.f32 1.442695, %v910_v14  ;;  %v926_v21 = vsel %vm546_vm3, %v3517_v15, 0.0 }
 0x541   : > { %927 = vadd.xlane.f32.xlu0 %v926_v21  ;;  %v923_v22 = vsel %vm546_vm3, %v3519_v16, 0.0 }
 0x542   : > { %3110 = vpow2.f32 %v921_v20  ;;  %2842 = vmatprep.subr.bf16.mxu1 %v2841_v17  ;;  %924 = vadd.xlane.f32.xlu1 %v923_v22 }
 0x543   : > { %2844 = vmatpush3.bf16.msra.mxu1 %v2841_v17 }
 0x544   : > { %v3525_v23 = vpop.eup %3104 }
 0x545   : > { %v929_v25 = vsel %vm546_vm3, %v3525_v23, 0.0 }
 0x546   : > { %930 = vadd.xlane.f32.xlu1 %v929_v25 }
 0x548   : > { %v3529_v26 = vpop.eup %3106 }
 0x549   : > { %v3531_v27 = vpop.eup %3108  ;;  %v935_v29 = vsel %vm546_vm3, %v3529_v26, 0.0 }
 0x54a   : > { %936 = vadd.xlane.f32.xlu1 %v935_v29  ;;  %v932_v30 = vsel %vm546_vm3, %v3531_v27, 0.0 }
 0x54b   : > { %933 = vadd.xlane.f32.xlu0 %v932_v30 }
 0x54c   : > { %v3537_v31 = vpop.eup %3110 }
 0x54d   : > { %v938_v33 = vsel %vm546_vm3, %v3537_v31, 0.0 }
 0x54f   : > { %939 = vadd.xlane.f32.xlu0 %v938_v33 }
 0x55b   : > { %3027 = vrot.lane.b32.xlu1 %v3287_v28, %s3192_s12 }
 0x55f   : > { %3032 = vrot.lane.b32.xlu1 %v3277_v18, %s3193_s13 }
 0x563   : > { %3042 = vrot.lane.b32.xlu1 %v3287_v28, %s3193_s13 }
 0x565   : > { %3022 = vrot.lane.b32.xlu0 %v3284_v24, %s3192_s12 }
 0x567   : > { %1771 = vrot.lane.b32.xlu1 %v3312_v50, %s3194_s14  ;;  %v3564_v50 = vadd.f32 %v3515_v41, %v3366_v6  ;;  %v1468_v41 = vsel %vm546_vm3, %v3584_v37, -inf }
 0x569   : > { %3037 = vrot.lane.b32.xlu0 %v3284_v24, %s3193_s13 }
 0x56b   : > { %1775 = vrot.lane.b32.xlu1 %v3320_v52, %s3194_s14  ;;  %v1453_v52 = vsel %vm546_vm3, %v3560_v35, -inf }
 0x56d   : > { %1769 = vrot.lane.b32.xlu0 %v3279_v19, %s3194_s14  ;;  %v1456_v19 = vsel %vm546_vm3, %v3556_v34, -inf }
 0x56f   : > { %1779 = vrot.lane.b32.xlu1 %v3328_v54, %s3194_s14  ;;  %v3578_v54 = vadd.f32 %v3507_v38, %v3347_v61 }
 0x571   : > { %1773 = vrot.lane.b32.xlu0 %v3314_v51, %s3194_s14  ;;  %v3570_v51 = vadd.f32 %v3509_v39, %v3353_v63  ;;  %v1462_v39 = vsel %vm546_vm3, %v3578_v54, -inf }
 0x573   : > { %v1459_v36 = vsel %vm546_vm3, %v3570_v51, -inf }
 0x575   : > { %1777 = vrot.lane.b32.xlu0 %v3322_v53, %s3194_s14  ;;  %v1465_v53 = vsel %vm546_vm3, %v3564_v50, -inf }
 0x593   : > { %1457 = vmax.xlane.f32.xlu1 %v1456_v19 }
 0x594   : > { %1454 = vmax.xlane.f32.xlu0 %v1453_v52 }
 0x597   : > { %1466 = vmax.xlane.f32.xlu1 %v1465_v53 }
 0x598   : > { %1460 = vmax.xlane.f32.xlu0 %v1459_v36 }
 0x59c   : > { %1463 = vmax.xlane.f32.xlu0 %v1462_v39 }
 0x5a0   : > { %1469 = vmax.xlane.f32.xlu0 %v1468_v41 }
 0x5a8   : > { %3047 = vrot.lane.b32.xlu1 %v3277_v18, %s3195_s15 }
 0x5ce   : > { %v928_v43 = vpop.xlane.xlu0 %927 }
 0x5cf   : > { %v925_v38 = vpop.xlane.xlu1 %924 }
 0x5d0   : > { %3112 = vrcp.f32 %v925_v38 }
 0x5d1   : > { %3114 = vrcp.f32 %v928_v43 }
 0x5d3   : > { %v931_v42 = vpop.xlane.xlu1 %930 }
 0x5d4   : > { %3116 = vrcp.f32 %v931_v42 }
 0x5d7   : > { %v937_v44 = vpop.xlane.xlu1 %936 }
 0x5d8   : > { %v934_v45 = vpop.xlane.xlu0 %933 }
 0x5d9   : > { %3118 = vrcp.f32 %v934_v45 }
 0x5da   : > { %v3113_v40 = vpop.eup %3112  ;;  %3120 = vrcp.f32 %v937_v44 }
 0x5db   : > { %v3028_v46 = vpop.permute.xlu1 %3027  ;;  %v947_v47 = vmul.f32 %v3113_v40, %v3519_v16  ;;  %v3115_v21 = vpop.eup %3114 }
 0x5dc   : > { %v940_v48 = vpop.xlane.xlu0 %939  ;;  %v3030_v60 = vunpack.i.h.bf16 %v3028_v46  ;;  %v3029_v62 = vunpack.i.l.bf16 %v3028_v46  ;;  %v948_v33 = vmul.f32 %v3115_v21, %v3517_v15  ;;  %v399_v21 = vld [vmem:[%s3779_s3 + $0x8] sm:$0xff] }
 0x5dd   : > { %2648 = vmatprep.mubr.msk.f32.mxu1 %vm546_vm3, %v947_v47  ;;  %3122 = vrcp.f32 %v940_v48 }
 0x5de   : > { %v2849_v13 = vpack.c.bf16 %v3030_v60, %v3029_v62  ;;  %v3117_v30 = vpop.eup %3116 }
 0x5df   : > { %v3033_v49 = vpop.permute.xlu1 %3032  ;;  %v949_v53 = vmul.f32 %v3117_v30, %v3525_v23 }
 0x5e0   : > { %v3035_v57 = vunpack.i.h.bf16 %v3033_v49  ;;  %v3034_v58 = vunpack.i.l.bf16 %v3033_v49  ;;  %v3023_v59 = vpop.permute.xlu0 %3022 }
 0x5e1   : > { %v3025_v0 = vunpack.i.h.bf16 %v3023_v59  ;;  %v3024_v1 = vunpack.i.l.bf16 %v3023_v59 }
 0x5e2   : > { %v2883_v2 = vpack.c.bf16 %v3035_v57, %v3034_v58 }
 0x5e3   : > { %v2845_v3 = vpack.c.bf16 %v3025_v0, %v3024_v1  ;;  %v3043_v14 = vpop.permute.xlu1 %3042  ;;  %v3119_v19 = vpop.eup %3118 }
 0x5e4   : > { %v3038_v4 = vpop.permute.xlu0 %3037  ;;  %2885 = vmatprep.subr.msk.bf16.mxu0 %vm3296_vm2, %v2883_v2  ;;  %v3045_v22 = vunpack.i.h.bf16 %v3043_v14  ;;  %v3044_v25 = vunpack.i.l.bf16 %v3043_v14  ;;  %v3121_v36 = vpop.eup %3120  ;;  %v950_v39 = vmul.f32 %v3119_v19, %v3531_v27 }
 0x5e5   : > { %v3040_v16 = vunpack.i.h.bf16 %v3038_v4  ;;  %v3039_v17 = vunpack.i.l.bf16 %v3038_v4  ;;  %2846 = vmatprep.subr.bf16.mxu1 %v2845_v3  ;;  %2888 = vmatpush3.bf16.xpose.msk.msra.mxu0 %vm3296_vm2, %v2883_v2  ;;  %v951_v15 = vmul.f32 %v3121_v36, %v3529_v26 }
 0x5e6   : > { %2848 = vmatpush3.bf16.msra.mxu1 %v2845_v3  ;;  %v2895_v52 = vpack.c.bf16 %v3045_v22, %v3044_v25  ;;  %v398_v22 = vld [vmem:[%s3779_s3] sm:$0xff] }
 0x5e7   : > { %v2889_v20 = vpack.c.bf16 %v3040_v16, %v3039_v17  ;;  %2850 = vmatprep.subr.bf16.mxu1 %v2849_v13  ;;  %v3123_v41 = vpop.eup %3122  ;;  %v1772_v38 = vpop.permute.xlu1 %1771 }
 0x5e8   : > { %v1770_v29 = vpop.permute.xlu0 %1769  ;;  %v952_v23 = vmul.f32 %v3123_v41, %v3537_v31 }
 0x5e9   : > { %2891 = vmatprep.subr.msk.bf16.mxu0 %vm3296_vm2, %v2889_v20  ;;  %2744 = vmatprep.mubr.msk.f32.mxu0 %vm420_vm1, %v1770_v29 }
 0x5ea   : > { %2852 = vmatpush3.bf16.msra.mxu1 %v2849_v13 }
 0x5eb   : > { %v1776_v43 = vpop.permute.xlu1 %1775  ;;  %2657 = vmatprep.subr.mxu1 %v399_v21 }
 0x5ec   : > { %v1774_v42 = vpop.permute.xlu0 %1773 }
 0x5ed   : > { %2649 = vmatmul.mubr.msk.f32.vlgmr.msra.gmra.mrb[6].mxu1 %vm546_vm3, %v948_v33  ;;  %2894 = vmatpush3.bf16.xpose.msk.msra.mxu0 %vm3296_vm2, %v2889_v20 }
 0x5ee   : > { %2651 = vmatprep.mubr.msk.f32.mxu1 %vm546_vm3, %v949_v53  ;;  %2897 = vmatprep.subr.msk.bf16.mxu0 %vm3296_vm2, %v2895_v52 }
 0x5ef   : > { %v1780_v26 = vpop.permute.xlu1 %1779  ;;  %2658 = vmatpush3.msra.mxu1 %v399_v21 }
 0x5f0   : > { %v1778_v27 = vpop.permute.xlu0 %1777  ;;  %2668 = vmatprep.subr.mxu1 %v398_v22 }
 0x5f1   : > { %2652 = vmatmul.mubr.msk.f32.gmra.mrb[8].mxu1 %vm546_vm3, %v950_v39 }
 0x5f2   : > { %2654 = vmatprep.mubr.msk.f32.mxu1 %vm546_vm3, %v951_v15 }
 0x5f5   : > { %2655 = vmatmul.mubr.msk.f32.gmra.mrb[10].mxu1 %vm546_vm3, %v952_v23  ;;  %2900 = vmatpush3.bf16.xpose.msk.msra.mxu0 %vm3296_vm2, %v2895_v52 }
 0x5fc   : > { %2745 = vmatmul.mubr.msk.f32.vlgmr.msra.gmra.mrb[24].mxu0 %vm420_vm1, %v1772_v38 }
 0x5fd   : > { %2747 = vmatprep.mubr.msk.f32.mxu0 %vm420_vm1, %v1774_v42 }
 0x600   : > { %2748 = vmatmul.mubr.msk.f32.gmra.mrb[26].mxu0 %vm420_vm1, %v1776_v43 }
 0x601   : > { %2750 = vmatprep.mubr.msk.f32.mxu0 %vm420_vm1, %v1778_v27 }
 0x604   : > { %2751 = vmatmul.mubr.msk.f32.gmra.mrb[28].mxu0 %vm420_vm1, %v1780_v26 }
 0x620   : > { %v1458_v31 = vpop.xlane.xlu1 %1457 }
 0x621   : > { %v1472_v44 = vsub.f32 %v3556_v34, %v1458_v31  ;;  %v1455_v32 = vpop.xlane.xlu0 %1454 }
 0x622   : > { %v1471_v45 = vsub.f32 %v3560_v35, %v1455_v32 }
 0x623   : > { %v1479_v40 = vmul.f32 1.442695, %v1472_v44 }
 0x624   : > { %v1477_v46 = vmul.f32 1.442695, %v1471_v45  ;;  %v1467_v47 = vpop.xlane.xlu1 %1466 }
 0x625   : > { %3124 = vpow2.f32 %v1479_v40  ;;  %v1475_v48 = vsub.f32 %v3564_v50, %v1467_v47  ;;  %v1461_v49 = vpop.xlane.xlu0 %1460 }
 0x626   : > { %3126 = vpow2.f32 %v1477_v46  ;;  %v1473_v57 = vsub.f32 %v3570_v51, %v1461_v49 }
 0x627   : > { %v1485_v58 = vmul.f32 1.442695, %v1475_v48 }
 0x628   : > { %v1481_v59 = vmul.f32 1.442695, %v1473_v57  ;;  %v3048_v25 = vpop.permute.xlu1 %3047 }
 0x629   : > { %v1464_v60 = vpop.xlane.xlu0 %1463  ;;  %v3050_v29 = vunpack.i.h.bf16 %v3048_v25  ;;  %v3049_v30 = vunpack.i.l.bf16 %v3048_v25 }
 0x62a   : > { %3128 = vpow2.f32 %v1481_v59  ;;  %v1474_v62 = vsub.f32 %v3578_v54, %v1464_v60 }
 0x62b   : > { %3130 = vpow2.f32 %v1485_v58  ;;  %v2871_v53 = vpack.c.bf16 %v3050_v29, %v3049_v30 }
 0x62c   : > { %v1483_v34 = vmul.f32 1.442695, %v1474_v62 }
 0x62d   : > { %v1470_v0 = vpop.xlane.xlu0 %1469 }
 0x62e   : > { %3132 = vpow2.f32 %v1483_v34  ;;  %v1476_v35 = vsub.f32 %v3584_v37, %v1470_v0 }
 0x62f   : > { %v3628_v1 = vpop.eup %3124 }
 0x630   : > { %v3630_v2 = vpop.eup %3126  ;;  %v1487_v50 = vmul.f32 1.442695, %v1476_v35  ;;  %v1492_v51 = vsel %vm546_vm3, %v3628_v1, 0.0 }
 0x631   : > { %1493 = vadd.xlane.f32.xlu0 %v1492_v51  ;;  %v1489_v3 = vsel %vm546_vm3, %v3630_v2, 0.0 }
 0x632   : > { %3134 = vpow2.f32 %v1487_v50  ;;  %1490 = vadd.xlane.f32.xlu1 %v1489_v3 }
 0x634   : > { %v3636_v54 = vpop.eup %3128 }
 0x635   : > { %v1495_v4 = vsel %vm546_vm3, %v3636_v54, 0.0  ;;  %v3640_v37 = vpop.eup %3130 }
 0x636   : > { %1496 = vadd.xlane.f32.xlu1 %v1495_v4  ;;  %v1501_v14 = vsel %vm546_vm3, %v3640_v37, 0.0 }
 0x638   : > { %v3642_v13 = vpop.eup %3132 }
 0x639   : > { %v1498_v16 = vsel %vm546_vm3, %v3642_v13, 0.0 }
 0x63a   : > { %1502 = vadd.xlane.f32.xlu1 %v1501_v14  ;;  %1499 = vadd.xlane.f32.xlu0 %v1498_v16 }
 0x63c   : > { %v3648_v17 = vpop.eup %3134 }
 0x63d   : > { %v1504_v20 = vsel %vm546_vm3, %v3648_v17, 0.0 }
 0x63e   : > { %1505 = vadd.xlane.f32.xlu0 %v1504_v20 }
 0x64b   : > { %3057 = vrot.lane.b32.xlu1 %v3287_v28, %s3195_s15 }
 0x654   : > { %3052 = vrot.lane.b32.xlu0 %v3284_v24, %s3195_s15 }
 0x6be   : > { %v1494_v36 = vpop.xlane.xlu0 %1493 }
 0x6bf   : > { %v1491_v33 = vpop.xlane.xlu1 %1490 }
 0x6c0   : > { %v2650_v19 = vpop.f32.mrb[6].mxu1  ;;  %3136 = vrcp.f32 %v1491_v33 }
 0x6c1   : > { %v1055_v52 = vpop.f32.mrb[7].mxu1  ;;  %3138 = vrcp.f32 %v1494_v36 }
 0x6c2   : > { %2659 = vmatprep.mubr.msk.f32.mxu1 %vm420_vm1, %v1055_v52 }
 0x6c3   : > { %v1497_v39 = vpop.xlane.xlu1 %1496  ;;  %2660 = vmatmul.mubr.msk.f32.vlgmr.msra.gmra.mrb[12].mxu1 %vm420_vm1, %v2650_v19 }
 0x6c4   : > { %2669 = vmatpush3.msra.mxu1 %v398_v22  ;;  %v2653_v41 = vpop.f32.mrb[8].mxu1  ;;  %3140 = vrcp.f32 %v1497_v39 }
 0x6c5   : > { %2872 = vmatprep.subr.bf16.mxu1 %v2871_v53  ;;  %v1065_v15 = vpop.f32.mrb[9].mxu1 }
 0x6c6   : > { %2662 = vmatprep.mubr.msk.f32.mxu1 %vm420_vm1, %v1065_v15 }
 0x6c7   : > { %v1503_v23 = vpop.xlane.xlu1 %1502  ;;  %v1500_v38 = vpop.xlane.xlu0 %1499  ;;  %2663 = vmatmul.mubr.msk.f32.gmra.mrb[14].mxu1 %vm420_vm1, %v2653_v41 }
 0x6c8   : > { %v2656_v42 = vpop.f32.mrb[10].mxu1  ;;  %3142 = vrcp.f32 %v1500_v38 }
 0x6c9   : > { %v1075_v43 = vpop.f32.mrb[11].mxu1  ;;  %3144 = vrcp.f32 %v1503_v23 }
 0x6ca   : > { %2665 = vmatprep.mubr.msk.f32.mxu1 %vm420_vm1, %v1075_v43  ;;  %v3137_v58 = vpop.eup %3136 }
 0x6cb   : > { %v1506_v27 = vpop.xlane.xlu0 %1505  ;;  %2666 = vmatmul.mubr.msk.f32.gmra.mrb[16].mxu1 %vm420_vm1, %v2656_v42  ;;  %v3058_v26 = vpop.permute.xlu1 %3057 }
 0x6cc   : > { %2670 = vmatprep.mubr.msk.f32.mxu1 %vm420_vm1, %v3481_v8  ;;  %v3060_v31 = vunpack.i.h.bf16 %v3058_v26  ;;  %v3059_v45 = vunpack.i.l.bf16 %v3058_v26  ;;  %3146 = vrcp.f32 %v1506_v27  ;;  %v3139_v34 = vpop.eup %3138 }
 0x6ce   : > { %v2879_v60 = vpack.c.bf16 %v3060_v31, %v3059_v45  ;;  %v3141_v35 = vpop.eup %3140 }
 0x6cf   : > { %v3053_v44 = vpop.permute.xlu0 %3052  ;;  %2671 = vmatmul.mubr.msk.f32.vlgmr.msra.gmra.mrb[12].mxu1 %vm420_vm1, %v3479_v7  ;;  %v2746_v32 = vpop.f32.mrb[24].mxu0  ;;  %v1515_v4 = vmul.f32 %v3141_v35, %v3636_v54  ;;  %v400_v54 = vld [vmem:[%s3779_s3 + $0x10] sm:$0xff] }
 0x6d0   : > { %v3055_v40 = vunpack.i.h.bf16 %v3053_v44  ;;  %v3054_v46 = vunpack.i.l.bf16 %v3053_v44  ;;  %2874 = vmatpush3.bf16.msra.mxu1 %v2871_v53  ;;  %2673 = vmatprep.mubr.msk.f32.mxu1 %vm420_vm1, %v3485_v10  ;;  %v1889_v47 = vadd.f32 %v2746_v32, %v3335_v55  ;;  %v1883_v48 = vpop.f32.mrb[25].mxu0 }
 0x6d1   : > { %v1884_v8 = vadd.f32 %v1883_v48, %v3340_v56 }
 0x6d2   : > { %v2875_v49 = vpack.c.bf16 %v3055_v40, %v3054_v46  ;;  %v1915_v57 = vsel %vm546_vm3, %v1889_v47, -inf  ;;  %v3143_v3 = vpop.eup %3142 }
 0x6d3   : > { %2674 = vmatmul.mubr.msk.f32.gmra.mrb[14].mxu1 %vm420_vm1, %v3483_v9  ;;  %1916 = vmax.xlane.f32.xlu0 %v1915_v57  ;;  %v2749_v7 = vpop.f32.mrb[26].mxu0  ;;  %v1912_v59 = vsel %vm546_vm3, %v1884_v8, -inf  ;;  %v1513_v9 = vmul.f32 %v3137_v58, %v3630_v2  ;;  %v1514_v2 = vmul.f32 %v3139_v34, %v3628_v1  ;;  %v3145_v14 = vpop.eup %3144 }
 0x6d4   : > { %2676 = vmatprep.mubr.msk.f32.mxu1 %vm420_vm1, %v3489_v12  ;;  %2876 = vmatprep.subr.bf16.mxu1 %v2875_v49  ;;  %v1899_v55 = vadd.f32 %v2749_v7, %v3347_v61  ;;  %v1893_v56 = vpop.f32.mrb[27].mxu0  ;;  %v1517_v16 = vmul.f32 %v3145_v14, %v3640_v37 }
 0x6d5   : > { %v1894_v10 = vadd.f32 %v1893_v56, %v3353_v63  ;;  %1913 = vmax.xlane.f32.xlu1 %v1912_v59  ;;  %2878 = vmatpush3.bf16.msra.mxu1 %v2875_v49 }
 0x6d6   : > { %2880 = vmatprep.subr.bf16.mxu1 %v2879_v60  ;;  %v1921_v62 = vsel %vm546_vm3, %v1899_v55, -inf }
 0x6d7   : > { %2677 = vmatmul.mubr.msk.f32.gmra.mrb[16].mxu1 %vm420_vm1, %v3487_v11  ;;  %v2752_v0 = vpop.f32.mrb[28].mxu0  ;;  %v1918_v12 = vsel %vm546_vm3, %v1894_v10, -inf }
 0x6d8   : > { %2712 = vmatprep.mubr.msk.f32.mxu1 %vm546_vm3, %v1513_v9  ;;  %v1909_v61 = vadd.f32 %v2752_v0, %v3361_v5  ;;  %v1903_v63 = vpop.f32.mrb[29].mxu0  ;;  %1919 = vmax.xlane.f32.xlu0 %v1918_v12  ;;  %v1516_v5 = vmul.f32 %v3143_v3, %v3642_v13 }
 0x6d9   : > { %v1904_v50 = vadd.f32 %v1903_v63, %v3366_v6  ;;  %1922 = vmax.xlane.f32.xlu1 %v1921_v62  ;;  %2882 = vmatpush3.bf16.msra.mxu1 %v2879_v60  ;;  %v3147_v6 = vpop.eup %3146 }
 0x6da   : > { %v1927_v51 = vsel %vm546_vm3, %v1909_v61, -inf  ;;  %v1518_v1 = vmul.f32 %v3147_v6, %v3648_v17  ;;  %2721 = vmatprep.subr.mxu1 %v400_v54  ;;  %v401_v6 = vld [vmem:[%s3779_s3 + $0x18] sm:$0xff] }
 0x6db   : > { %v1924_v11 = vsel %vm546_vm3, %v1904_v50, -inf }
 0x6dc   : > { %2713 = vmatmul.mubr.msk.f32.vlgmr.msra.gmra.mrb[18].mxu1 %vm546_vm3, %v1514_v2  ;;  %1925 = vmax.xlane.f32.xlu0 %v1924_v11 }
 0x6dd   : > { %1928 = vmax.xlane.f32.xlu1 %v1927_v51  ;;  %2715 = vmatprep.mubr.msk.f32.mxu1 %vm546_vm3, %v1515_v4 }
 0x6de   : > { %2722 = vmatpush3.msra.mxu1 %v400_v54 }
 0x6e0   : > { %2716 = vmatmul.mubr.msk.f32.gmra.mrb[20].mxu1 %vm546_vm3, %v1516_v5 }
 0x6e1   : > { %2718 = vmatprep.mubr.msk.f32.mxu1 %vm546_vm3, %v1517_v16 }
 0x6e4   : > { %2719 = vmatmul.mubr.msk.f32.gmra.mrb[22].mxu1 %vm546_vm3, %v1518_v1 }
 0x760   : > { %v1917_v20 = vpop.xlane.xlu0 %1916 }
 0x761   : > { %v1931_v21 = vsub.f32 %v1889_v47, %v1917_v20 }
 0x762   : > { %v1914_v13 = vpop.xlane.xlu1 %1913 }
 0x763   : > { %v1938_v22 = vmul.f32 1.442695, %v1931_v21  ;;  %v1930_v25 = vsub.f32 %v1884_v8, %v1914_v13 }
 0x765   : > { %3148 = vpow2.f32 %v1938_v22  ;;  %v1936_v37 = vmul.f32 1.442695, %v1930_v25  ;;  %v1920_v29 = vpop.xlane.xlu0 %1919 }
 0x766   : > { %v1932_v30 = vsub.f32 %v1894_v10, %v1920_v29  ;;  %v1923_v33 = vpop.xlane.xlu1 %1922 }
 0x767   : > { %3150 = vpow2.f32 %v1936_v37  ;;  %v1933_v17 = vsub.f32 %v1899_v55, %v1923_v33 }
 0x768   : > { %v1940_v19 = vmul.f32 1.442695, %v1932_v30 }
 0x769   : > { %v1942_v52 = vmul.f32 1.442695, %v1933_v17  ;;  %v1926_v53 = vpop.xlane.xlu0 %1925  ;;  %v2419_v17 = vld [vmem:[%s3780_s4] ss:$0 sm:$0xff] }
 0x76a   : > { %3152 = vpow2.f32 %v1940_v19  ;;  %v1934_v36 = vsub.f32 %v1904_v50, %v1926_v53  ;;  %v1929_v39 = vpop.xlane.xlu1 %1928 }
 0x76b   : > { %3154 = vpow2.f32 %v1942_v52  ;;  %v1935_v41 = vsub.f32 %v1909_v61, %v1929_v39  ;;  %v3172_v39 = vld [vmem:[%s3260_s11 + $0x8] sm:$0xff] }
 0x76c   : > { %v1944_v15 = vmul.f32 1.442695, %v1934_v36 }
 0x76d   : > { %v1946_v23 = vmul.f32 1.442695, %v1935_v41 }
 0x76e   : > { %3156 = vpow2.f32 %v1944_v15  ;;  %v3173_v15 = vld [vmem:[%s3260_s11] sm:$0xff] }
 0x76f   : > { %v3707_v38 = vpop.eup %3148  ;;  %3158 = vpow2.f32 %v1946_v23 }
 0x770   : > { %v1951_v42 = vsel %vm546_vm3, %v3707_v38, 0.0 }
 0x771   : > { %v3151_v43 = vpop.eup %3150  ;;  %1952 = vadd.xlane.f32.xlu1 %v1951_v42 }
 0x772   : > { %v1948_v27 = vsel %vm546_vm3, %v3151_v43, 0.0 }
 0x773   : > { %1949 = vadd.xlane.f32.xlu0 %v1948_v27 }
 0x774   : > { %v3712_v26 = vpop.eup %3152 }
 0x775   : > { %v3714_v31 = vpop.eup %3154  ;;  %v1954_v44 = vsel %vm546_vm3, %v3712_v26, 0.0 }
 0x776   : > { %v1957_v32 = vsel %vm546_vm3, %v3714_v31, 0.0 }
 0x777   : > { %1955 = vadd.xlane.f32.xlu0 %v1954_v44  ;;  %1958 = vadd.xlane.f32.xlu1 %v1957_v32  ;;  %v3175_v44 = vld [vmem:[%s3260_s11 + $0x10] sm:$0xff] }
 0x778   : > { %v3157_v45 = vpop.eup %3156 }
 0x779   : > { %v3720_v40 = vpop.eup %3158  ;;  %v1960_v46 = vsel %vm546_vm3, %v3157_v45, 0.0 }
 0x77a   : > { %v1963_v47 = vsel %vm546_vm3, %v3720_v40, 0.0 }
 0x77b   : > { %1961 = vadd.xlane.f32.xlu0 %v1960_v46  ;;  %1964 = vadd.xlane.f32.xlu1 %v1963_v47 }
 0x78c   : > { %3067 = vrot.lane.b32.xlu1 %v3284_v24, %s3196_s23 }
 0x790   : > { %3072 = vrot.lane.b32.xlu1 %v3287_v28, %s3196_s23 }
 0x791   : > { %3062 = vrot.lane.b32.xlu0 %v3277_v18, %s3196_s23 }
 0x7af   : > { %v2714_v48 = vpop.f32.mrb[18].mxu1 }
 0x7b0   : > { %v1621_v8 = vpop.f32.mrb[19].mxu1 }
 0x7b1   : > { %2723 = vmatprep.mubr.msk.f32.mxu1 %vm420_vm1, %v1621_v8 }
 0x7b2   : > { %2724 = vmatmul.mubr.msk.f32.vlgmr.msra.gmra.mrb[12].mxu1 %vm420_vm1, %v2714_v48  ;;  %v3176_v48 = vld [vmem:[%s3260_s11 + $0x28] sm:$0xff] }
 0x7b3   : > { %v2717_v49 = vpop.f32.mrb[20].mxu1 }
 0x7b4   : > { %v1631_v57 = vpop.f32.mrb[21].mxu1 }
 0x7b5   : > { %2726 = vmatprep.mubr.msk.f32.mxu1 %vm420_vm1, %v1631_v57 }
 0x7b6   : > { %2727 = vmatmul.mubr.msk.f32.gmra.mrb[14].mxu1 %vm420_vm1, %v2717_v49  ;;  %v3177_v49 = vld [vmem:[%s3260_s11 + $0x20] sm:$0xff] }
 0x7b7   : > { %v2720_v58 = vpop.f32.mrb[22].mxu1 }
 0x7b8   : > { %v1641_v7 = vpop.f32.mrb[23].mxu1 }
 0x7b9   : > { %2729 = vmatprep.mubr.msk.f32.mxu1 %vm420_vm1, %v1641_v7 }
 0x7ba   : > { %2730 = vmatmul.mubr.msk.f32.gmra.mrb[16].mxu1 %vm420_vm1, %v2720_v58 }
 0x7fe   : > { %v1953_v24 = vpop.xlane.xlu1 %1952 }
 0x800   : > { %v1950_v18 = vpop.xlane.xlu0 %1949 }
 0x801   : > { %3160 = vrcp.f32 %v1950_v18 }
 0x804   : > { %v1956_v28 = vpop.xlane.xlu0 %1955  ;;  %v1959_v59 = vpop.xlane.xlu1 %1958 }
 0x808   : > { %v1962_v60 = vpop.xlane.xlu0 %1961  ;;  %v1965_v55 = vpop.xlane.xlu1 %1964 }
 0x809   : > { %3162 = vrcp.f32 %v1962_v60 }
 0x80a   : > { %3164 = vrcp.f32 %v1953_v24 }
 0x80b   : > { %v3161_v56 = vpop.eup %3160  ;;  %3166 = vrcp.f32 %v1965_v55 }
 0x80c   : > { %v3063_v10 = vpop.permute.xlu0 %3062  ;;  %v3068_v9 = vpop.permute.xlu1 %3067  ;;  %v1972_v62 = vmul.f32 %v3161_v56, %v3151_v43  ;;  %3168 = vrcp.f32 %v1956_v28 }
 0x80d   : > { %v3065_v34 = vunpack.i.h.bf16 %v3063_v10  ;;  %v3064_v0 = vunpack.i.l.bf16 %v3063_v10  ;;  %v3070_v12 = vunpack.i.h.bf16 %v3068_v9  ;;  %v3069_v35 = vunpack.i.l.bf16 %v3068_v9 }
 0x80e   : > { %2765 = vmatprep.mubr.msk.f32.mxu0 %vm546_vm3, %v1972_v62  ;;  %3170 = vrcp.f32 %v1959_v59 }
 0x80f   : > { %v2901_v61 = vpack.c.bf16 %v3065_v34, %v3064_v0  ;;  %v2905_v50 = vpack.c.bf16 %v3070_v12, %v3069_v35 }
 0x810   : > { %v3073_v63 = vpop.permute.xlu1 %3072 }
 0x811   : > { %v3075_v2 = vunpack.i.h.bf16 %v3073_v63  ;;  %v3074_v51 = vunpack.i.l.bf16 %v3073_v63  ;;  %2902 = vmatprep.subr.bf16.mxu0 %v2901_v61  ;;  %2913 = vmatprep.subr.bf16.mxu1 %v2901_v61 }
 0x812   : > { %2904 = vmatpush3.bf16.msra.mxu0 %v2901_v61  ;;  %2916 = vmatpush3.bf16.msra.mxu1 %v2901_v61 }
 0x813   : > { %v3163_v3 = vpop.eup %3162  ;;  %2906 = vmatprep.subr.bf16.mxu0 %v2905_v50  ;;  %2914 = vmatprep.subr.bf16.mxu1 %v2905_v50  ;;  %v2909_v4 = vpack.c.bf16 %v3075_v2, %v3074_v51 }
 0x814   : > { %v1976_v11 = vmul.f32 %v3163_v3, %v3157_v45  ;;  %v3165_v14 = vpop.eup %3164 }
 0x815   : > { %v3167_v5 = vpop.eup %3166  ;;  %v1973_v1 = vmul.f32 %v3165_v14, %v3707_v38 }
 0x816   : > { %2908 = vmatpush3.bf16.msra.mxu0 %v2905_v50  ;;  %2917 = vmatpush3.bf16.msra.mxu1 %v2905_v50  ;;  %v3169_v16 = vpop.eup %3168  ;;  %v1977_v54 = vmul.f32 %v3167_v5, %v3720_v40 }
 0x817   : > { %2771 = vmatprep.mubr.msk.f32.mxu1 %vm546_vm3, %v1976_v11  ;;  %2910 = vmatprep.subr.bf16.mxu0 %v2909_v4  ;;  %v1974_v21 = vmul.f32 %v3169_v16, %v3712_v26  ;;  %v3174_v26 = vld [vmem:[%s3260_s11 + $0x18] sm:$0xff] }
 0x818   : > { %2915 = vmatprep.subr.bf16.mxu1 %v2909_v4  ;;  %v3171_v20 = vpop.eup %3170 }
 0x819   : > { %v1975_v13 = vmul.f32 %v3171_v20, %v3714_v31 }
 0x81a   : > { %2912 = vmatpush3.bf16.msra.mxu0 %v2909_v4  ;;  %2918 = vmatpush3.bf16.msra.mxu1 %v2909_v4 }
 0x81b   : > { %2774 = vmatprep.subr.mxu1 %v401_v6 }
 0x81d   : > { %2766 = vmatmul.mubr.msk.f32.vlgmr.msra.gmra.mrb[30].mxu0 %vm546_vm3, %v1973_v1  ;;  %2772 = vmatmul.mubr.msk.f32.vlgmr.msra.gmra.mrb[24].mxu1 %vm546_vm3, %v1977_v54 }
 0x81e   : > { %2768 = vmatprep.mubr.msk.f32.mxu0 %vm546_vm3, %v1974_v21  ;;  %2775 = vmatpush3.msra.mxu1 %v401_v6 }
 0x821   : > { %2769 = vmatmul.mubr.msk.f32.gmra.mrb[32].mxu0 %vm546_vm3, %v1975_v13 }
 0x8f0   : > { %v2767_v22 = vpop.f32.mrb[30].mxu0  ;;  %v2773_v25 = vpop.f32.mrb[24].mxu1 }
 0x8f1   : > { %v2080_v37 = vpop.f32.mrb[31].mxu0  ;;  %v2100_v29 = vpop.f32.mrb[25].mxu1 }
 0x8f2   : > { %2776 = vmatprep.mubr.msk.f32.mxu1 %vm420_vm1, %v2080_v37 }
 0x8f3   : > { %2777 = vmatmul.mubr.msk.f32.vlgmr.msra.gmra.mrb[12].mxu1 %vm420_vm1, %v2767_v22 }
 0x8f4   : > { %v2770_v30 = vpop.f32.mrb[32].mxu0 }
 0x8f5   : > { %v2090_v33 = vpop.f32.mrb[33].mxu0 }
 0x8f6   : > { %2779 = vmatprep.mubr.msk.f32.mxu1 %vm420_vm1, %v2090_v33 }
 0x8f7   : > { %2780 = vmatmul.mubr.msk.f32.gmra.mrb[14].mxu1 %vm420_vm1, %v2770_v30 }
 0x8f8   : > { %2782 = vmatprep.mubr.msk.f32.mxu1 %vm420_vm1, %v2100_v29 }
 0x8fb   : > { %2783 = vmatmul.mubr.msk.f32.gmra.mrb[16].mxu1 %vm420_vm1, %v2773_v25 }
 0x9c6   : > { %v2778_v19 = vpop.f32.mrb[12].mxu1 }
 0x9c7   : > { %v2236_v52 = vadd.f32 %v2778_v19, %v2419_v17  ;;  %v2193_v53 = vpop.f32.mrb[13].mxu1 }
 0x9c8   : > { %v2235_v36 = vadd.f32 %v2419_v17, %v2193_v53 }
 0x9c9   : > { %v2242_v41 = vadd.f32 %v3172_v39, %v2236_v52 }
 0x9ca   : > { %v2241_v23 = vadd.f32 %v3173_v15, %v2235_v36  ;;  %v2781_v38 = vpop.f32.mrb[14].mxu1 }
 0x9cb   : > { %2248 = vst.msk [vmem:[%s253_s7 + $0x8] sm:$0xff] %vm272_vm0, %v2242_v41  ;;  %v2238_v42 = vadd.f32 %v2781_v38, %v2419_v17  ;;  %v2203_v43 = vpop.f32.mrb[15].mxu1 }
 0x9cc   : > { %2247 = vst.msk [vmem:[%s253_s7] sm:$0xff] %vm272_vm0, %v2241_v23  ;;  %v2237_v27 = vadd.f32 %v2419_v17, %v2203_v43 }
 0x9cd   : > { %v2244_v31 = vadd.f32 %v3174_v26, %v2238_v42 }
 0x9ce   : > { %v2243_v32 = vadd.f32 %v3175_v44, %v2237_v27  ;;  %v2784_v45 = vpop.f32.mrb[16].mxu1 }
 0x9cf   : > { %2250 = vst.msk [vmem:[%s253_s7 + $0x18] sm:$0xff] %vm272_vm0, %v2244_v31  ;;  %v2240_v40 = vadd.f32 %v2784_v45, %v2419_v17  ;;  %v2213_v46 = vpop.f32.mrb[17].mxu1 }
 0x9d0   : > { %2249 = vst.msk [vmem:[%s253_s7 + $0x10] sm:$0xff] %vm272_vm0, %v2243_v32  ;;  %v2239_v47 = vadd.f32 %v2419_v17, %v2213_v46 }
 0x9d1   : > { %v2246_v8 = vadd.f32 %v3176_v48, %v2240_v40 }
 0x9d2   : > { %v2245_v57 = vadd.f32 %v3177_v49, %v2239_v47 }
 0x9d3   : > { %2252 = vst.msk [vmem:[%s253_s7 + $0x28] sm:$0xff] %vm272_vm0, %v2246_v8 }
 0x9d4   : > { %2251 = vst.msk [vmem:[%s253_s7 + $0x20] sm:$0xff] %vm272_vm0, %v2245_v57 }
 0x9d5 PF: > { %s16_s21 = sadd.s32 1, %s3184_s21  }
 0x9d6   : > { %p13_p4 = scmp.ge.s32.totalorder %s16_s21, 4  }
 0x9d8   :  { %15 = sbr.rel (!%p13_p4) target bundleno = 1 (0x1), region = 74 }

</bundles_post_ra>
